<compile_context>
chip_gen: v5e
topology: v5e:2x2
jax: 0.10.0
libtpu: 0.0.40
codegen_flags: <defaults>
</compile_context>

<pallas_src>
import jax
import jax.numpy as jnp
from jax.experimental import pallas as pl
from jax.experimental.pallas import tpu as pltpu

LANE = 128


def _round_up(n, m):
    return ((n + m - 1) // m) * m


def _pick_tb(B, max_tb=512):
    """Largest multiple-of-128 tile up to max_tb; keep >=2 grid steps for v7x."""
    tb = min(max_tb, _round_up(B, 128))
    if B > 128 and pl.cdiv(B, tb) < 2:
        tb = max(128, _round_up(pl.cdiv(B, 2), 128))
    return tb


def vae_forward_kernel(
    x_ref, eps_ref,
    w1_ref, b1_ref,
    wml_ref, bml_ref,     # fused [mu || log_var || 0] projection (width zpad)
    wlv_ref, blv_ref,     # log_var projection aligned under mu (cols [0, z_dim))
    wd1_ref, bd1_ref,     # decoder layer 1, K padded to zpad with zero rows
    wd2_ref, bd2_ref,
    xp_ref, mulv_ref,
):
    # ---- Encoder layer 1 (bf16 MXU operands, f32 accumulation) ----
    h = jnp.dot(x_ref[...], w1_ref[...],
                preferred_element_type=jnp.float32) + b1_ref[...]
    h = jnp.maximum(h, 0.0)
    h16 = h.astype(jnp.bfloat16)

    # ---- Fused mu || log_var projection (lane-dense, width zpad=128) ----
    mulv = jnp.dot(h16, wml_ref[...],
                   preferred_element_type=jnp.float32) + bml_ref[...]
    # log_var replicated into columns [0, z_dim) so reparameterize is 128-lane
    # dense (no sub-lane slices, no cross-lane roll).
    lv_a = jnp.dot(h16, wlv_ref[...],
                   preferred_element_type=jnp.float32) + blv_ref[...]

    # ---- Reparameterize on the full slab: z = eps * exp(0.5*log_var) + mu ----
    # eps is zero beyond z_dim, and Wd1's rows beyond z_dim are zero, so the
    # padded z columns carry no contribution into the decoder.
    z = eps_ref[...] * jnp.exp(0.5 * lv_a) + mulv

    # ---- Decoder ----
    hd = jnp.dot(z.astype(jnp.bfloat16), wd1_ref[...],
                 preferred_element_type=jnp.float32) + bd1_ref[...]
    hd = jnp.maximum(hd, 0.0)
    logits = jnp.dot(hd.astype(jnp.bfloat16), wd2_ref[...],
                     preferred_element_type=jnp.float32) + bd2_ref[...]
    # sigmoid(x) = 0.5*tanh(0.5*x) + 0.5 : single EUP transcendental.
    x_p = 0.5 * jnp.tanh(0.5 * logits) + 0.5

    # Lane-dense stores (x_dim multiple of 128, slab width 128).
    xp_ref[...] = x_p.astype(xp_ref.dtype)
    mulv_ref[...] = mulv


def vae_forward(x, eps, params, z_dim, *, tb=None):
    """x: [B, x_dim] (bf16 preferred), eps: [B, z_dim] f32.

    Returns (x_p [B, x_dim] bf16, mu [B, z_dim] f32, log_var [B, z_dim] f32).
    """
    B, x_dim = x.shape
    hidden = params["w1"].shape[1]
    zpad = params["wml"].shape[1]

    # Ideally the caller already supplies bf16 (x is only used as an MXU operand).
    if x.dtype != jnp.bfloat16:
        x = x.astype(jnp.bfloat16)
    # Lane-pad eps to the slab width (tiny vs. the x / x_p streams).
    eps = eps.astype(jnp.float32)
    if eps.shape[1] != zpad:
        eps = jnp.pad(eps, ((0, 0), (0, zpad - eps.shape[1])))

    if tb is None:
        tb = _pick_tb(B)
    grid = (pl.cdiv(B, tb),)

    def act_spec(feat):                       # batch-tiled activations / outputs
        return pl.BlockSpec((tb, feat), lambda i: (i, 0))

    def res_spec(arr):                        # weights resident across the grid
        return pl.BlockSpec(arr.shape, lambda i: (0, 0))

    weight_names = ("w1", "b1", "wml", "bml", "wlv", "blv", "wd1", "bd1", "wd2", "bd2")
    weight_bytes = sum(int(params[k].size) * params[k].dtype.itemsize
                       for k in weight_names)
    flops = 2 * B * (x_dim * hidden + 2 * hidden * zpad
                     + zpad * hidden + hidden * x_dim)
    transcendentals = B * (zpad + x_dim)           # exp(slab) + tanh(x_dim)
    bytes_accessed = (B * x_dim * 2          # x   (bf16 in)
                      + B * zpad * 4         # eps (f32 in)
                      + weight_bytes
                      + B * x_dim * 2        # x_p (bf16 out)
                      + B * zpad * 4)        # mu||log_var slab (f32 out)

    x_p, mulv = pl.pallas_call(
        vae_forward_kernel,
        grid=grid,
        out_shape=(
            jax.ShapeDtypeStruct((B, x_dim), jnp.bfloat16),   # x_p
            jax.ShapeDtypeStruct((B, zpad), jnp.float32),     # mu || log_var slab
        ),
        in_specs=[
            act_spec(x_dim),          # x
            act_spec(zpad),           # eps (lane-padded)
            res_spec(params["w1"]), res_spec(params["b1"]),
            res_spec(params["wml"]), res_spec(params["bml"]),
            res_spec(params["wlv"]), res_spec(params["blv"]),
            res_spec(params["wd1"]), res_spec(params["bd1"]),
            res_spec(params["wd2"]), res_spec(params["bd2"]),
        ],
        out_specs=(act_spec(x_dim), act_spec(zpad)),
        compiler_params=pltpu.CompilerParams(
            dimension_semantics=("parallel",),
            vmem_limit_bytes=32 << 20,
        ),
        cost_estimate=pl.CostEstimate(
            flops=flops,
            transcendentals=transcendentals,
            bytes_accessed=bytes_accessed,
        ),
    )(
        x, eps,
        params["w1"], params["b1"],
        params["wml"], params["bml"],
        params["wlv"], params["blv"],
        params["wd1"], params["bd1"],
        params["wd2"], params["bd2"],
    )

    mu = mulv[:, :z_dim]
    log_var = mulv[:, z_dim:2 * z_dim]
    return x_p, mu, log_var


def init_params(key, x_dim, hidden, z_dim, zpad=LANE):
    """Linear-default init; mu/log_var fused + lane-padded; bf16 weights."""
    ks = jax.random.split(key, 5)

    def lin(k, fan_in, fan_out):
        bound = 1.0 / jnp.sqrt(fan_in)
        kw, kb = jax.random.split(k)
        w = jax.random.uniform(kw, (fan_in, fan_out), jnp.float32, -bound, bound)
        b = jax.random.uniform(kb, (1, fan_out), jnp.float32, -bound, bound)
        return w, b

    w1, b1 = lin(ks[0], x_dim, hidden)
    wmu, bmu = lin(ks[1], hidden, z_dim)
    wlv, blv = lin(ks[2], hidden, z_dim)
    wd1, bd1 = lin(ks[3], z_dim, hidden)
    wd2, bd2 = lin(ks[4], hidden, x_dim)

    assert 2 * z_dim <= zpad
    # Fused [mu || log_var || 0] projection (lane-padded to zpad).
    wml = (jnp.zeros((hidden, zpad), jnp.float32)
           .at[:, :z_dim].set(wmu)
           .at[:, z_dim:2 * z_dim].set(wlv))
    bml = (jnp.zeros((1, zpad), jnp.float32)
           .at[:, :z_dim].set(bmu)
           .at[:, z_dim:2 * z_dim].set(blv))
    # log_var projection aligned under mu (cols [0, z_dim)) for a lane-dense
    # reparameterize with no cross-lane moves.
    wlv_a = jnp.zeros((hidden, zpad), jnp.float32).at[:, :z_dim].set(wlv)
    blv_a = jnp.zeros((1, zpad), jnp.float32).at[:, :z_dim].set(blv)
    # Decoder layer-1 weight padded to K = zpad with zero rows (padded z cols inert).
    wd1_p = jnp.zeros((zpad, hidden), jnp.float32).at[:z_dim, :].set(wd1)

    bf16 = lambda a: a.astype(jnp.bfloat16)
    return dict(
        w1=bf16(w1), b1=b1,
        wml=bf16(wml), bml=bml,
        wlv=bf16(wlv_a), blv=blv_a,
        wd1=bf16(wd1_p), bd1=bd1,
        wd2=bf16(wd2), bd2=bd2,
    )


def reference_forward(x_bf16, eps, p, z_dim):
    """Pure-JAX reference with the same bf16-matmul / f32-accumulate numerics."""
    h = jnp.maximum(
        jnp.dot(x_bf16, p["w1"], preferred_element_type=jnp.float32) + p["b1"], 0.0)
    h16 = h.astype(jnp.bfloat16)
    mulv = jnp.dot(h16, p["wml"], preferred_element_type=jnp.float32) + p["bml"]
    mu = mulv[:, :z_dim]
    lv = mulv[:, z_dim:2 * z_dim]
    z = eps * jnp.exp(0.5 * lv) + mu
    hd = jnp.maximum(
        jnp.dot(z.astype(jnp.bfloat16), p["wd1"][:z_dim],
                preferred_element_type=jnp.float32) + p["bd1"], 0.0)
    logits = jnp.dot(hd.astype(jnp.bfloat16), p["wd2"],
                     preferred_element_type=jnp.float32) + p["bd2"]
    return jax.nn.sigmoid(logits), mu, lv


if __name__ == "__main__":
    # width = height = 16 -> x_dim = 256 (consistent with the module's assert).
    H, W = 16, 16
    x_dim = H * W
    hidden = 128
    z_dim = 32

    key = jax.random.PRNGKey(0)
    k_p, k1, k2, k3, k4, k5, k6 = jax.random.split(key, 7)

    params = init_params(k_p, x_dim, hidden, z_dim)

    # B=8: single partial tile; B=200: multi-tile with a partial final tile
    # (no host-side padding); B=256: exact multi-tile grid, resident weights.
    for B, kx, ke in ((8, k1, k2), (200, k3, k4), (256, k5, k6)):
        x_img = jax.random.uniform(kx, (B, 1, H, W), jnp.float32)   # NCHW in [0,1]
        x = x_img.reshape(B, x_dim).astype(jnp.bfloat16)            # bf16 input stream
        eps = jax.random.normal(ke, (B, z_dim), jnp.float32)        # reparam noise

        x_p, mu, log_var = jax.block_until_ready(vae_forward(x, eps, params, z_dim))

        xr, mr, lr = reference_forward(x, eps, params, z_dim)
        assert x_p.shape == (B, x_dim) and x_p.dtype == jnp.bfloat16
        assert mu.shape == (B, z_dim) and log_var.shape == (B, z_dim)
        assert jnp.allclose(x_p.astype(jnp.float32), xr, atol=5e-3, rtol=5e-3)
        assert jnp.allclose(mu, mr, atol=5e-3, rtol=5e-3)
        assert jnp.allclose(log_var, lr, atol=5e-3, rtol=5e-3)

    print("KERNEL_OK")
</pallas_src>

<mosaic_0001>
module attributes {stable_mosaic.version = 11 : i64} {
  func.func @vae_forward_kernel(%arg0: i32, %arg1: memref<128x256xbf16, #tpu.memory_space<vmem>>, %arg2: memref<128x128xf32, #tpu.memory_space<vmem>>, %arg3: memref<256x128xbf16, #tpu.memory_space<vmem>>, %arg4: memref<1x128xf32, #tpu.memory_space<vmem>>, %arg5: memref<128x128xbf16, #tpu.memory_space<vmem>>, %arg6: memref<1x128xf32, #tpu.memory_space<vmem>>, %arg7: memref<128x128xbf16, #tpu.memory_space<vmem>>, %arg8: memref<1x128xf32, #tpu.memory_space<vmem>>, %arg9: memref<128x128xbf16, #tpu.memory_space<vmem>>, %arg10: memref<1x128xf32, #tpu.memory_space<vmem>>, %arg11: memref<128x256xbf16, #tpu.memory_space<vmem>>, %arg12: memref<1x256xf32, #tpu.memory_space<vmem>>, %arg13: memref<128x256xbf16, #tpu.memory_space<vmem>>, %arg14: memref<128x128xf32, #tpu.memory_space<vmem>>) attributes {dimension_semantics = [#tpu.dimension_semantics<parallel>], iteration_bounds = array<i64: 1>, scalar_prefetch = 0 : i64, scratch_operands = 0 : i64, tpu.core_type = #tpu.core_type<tc>, window_params = [{transform_indices = @transform_0, window_bounds = array<i64: 128, 256>}, {transform_indices = @transform_1, window_bounds = array<i64: 128, 128>}, {pipeline_mode = #tpu.pipeline_mode<synchronous>, transform_indices = @transform_2, window_bounds = array<i64: 256, 128>}, {pipeline_mode = #tpu.pipeline_mode<synchronous>, transform_indices = @transform_3, window_bounds = array<i64: 1, 128>}, {pipeline_mode = #tpu.pipeline_mode<synchronous>, transform_indices = @transform_4, window_bounds = array<i64: 128, 128>}, {pipeline_mode = #tpu.pipeline_mode<synchronous>, transform_indices = @transform_5, window_bounds = array<i64: 1, 128>}, {pipeline_mode = #tpu.pipeline_mode<synchronous>, transform_indices = @transform_6, window_bounds = array<i64: 128, 128>}, {pipeline_mode = #tpu.pipeline_mode<synchronous>, transform_indices = @transform_7, window_bounds = array<i64: 1, 128>}, {pipeline_mode = #tpu.pipeline_mode<synchronous>, transform_indices = @transform_8, window_bounds = array<i64: 128, 128>}, {pipeline_mode = #tpu.pipeline_mode<synchronous>, transform_indices = @transform_9, window_bounds = array<i64: 1, 128>}, {pipeline_mode = #tpu.pipeline_mode<synchronous>, transform_indices = @transform_10, window_bounds = array<i64: 128, 256>}, {pipeline_mode = #tpu.pipeline_mode<synchronous>, transform_indices = @transform_11, window_bounds = array<i64: 1, 256>}, {transform_indices = @transform_12, window_bounds = array<i64: 128, 256>}, {transform_indices = @transform_13, window_bounds = array<i64: 128, 128>}]} {
    %c0 = arith.constant 0 : index
    %c0_0 = arith.constant 0 : index
    %0 = vector.load %arg1[%c0, %c0_0] : memref<128x256xbf16, #tpu.memory_space<vmem>>, vector<128x256xbf16>
    %c0_1 = arith.constant 0 : index
    %c0_2 = arith.constant 0 : index
    %1 = vector.load %arg3[%c0_1, %c0_2] : memref<256x128xbf16, #tpu.memory_space<vmem>>, vector<256x128xbf16>
    %cst = arith.constant dense<0.000000e+00> : vector<128x128xf32>
    %2 = tpu.matmul %0, %1, %cst {dimension_numbers = #tpu.dot_dimension_numbers<[1], [0], [0], [1], [0, 0, 1, 1], [], []>} : vector<128x256xbf16>, vector<256x128xbf16>, vector<128x128xf32> -> vector<128x128xf32>
    %c0_3 = arith.constant 0 : index
    %c0_4 = arith.constant 0 : index
    %3 = vector.load %arg4[%c0_3, %c0_4] : memref<1x128xf32, #tpu.memory_space<vmem>>, vector<1x128xf32>
    %4 = vector.broadcast %3 : vector<1x128xf32> to vector<128x128xf32>
    %5 = arith.addf %2, %4 : vector<128x128xf32>
    %cst_5 = arith.constant 0.000000e+00 : f32
    %6 = vector.broadcast %cst_5 : f32 to vector<128x128xf32>
    %7 = arith.maximumf %5, %6 : vector<128x128xf32>
    %8 = arith.truncf %7 : vector<128x128xf32> to vector<128x128xbf16>
    %c0_6 = arith.constant 0 : index
    %c0_7 = arith.constant 0 : index
    %9 = vector.load %arg5[%c0_6, %c0_7] : memref<128x128xbf16, #tpu.memory_space<vmem>>, vector<128x128xbf16>
    %cst_8 = arith.constant dense<0.000000e+00> : vector<128x128xf32>
    %10 = tpu.matmul %8, %9, %cst_8 {dimension_numbers = #tpu.dot_dimension_numbers<[1], [0], [0], [1], [0, 0, 1, 1], [], []>} : vector<128x128xbf16>, vector<128x128xbf16>, vector<128x128xf32> -> vector<128x128xf32>
    %c0_9 = arith.constant 0 : index
    %c0_10 = arith.constant 0 : index
    %11 = vector.load %arg6[%c0_9, %c0_10] : memref<1x128xf32, #tpu.memory_space<vmem>>, vector<1x128xf32>
    %12 = vector.broadcast %11 : vector<1x128xf32> to vector<128x128xf32>
    %13 = arith.addf %10, %12 : vector<128x128xf32>
    %c0_11 = arith.constant 0 : index
    %c0_12 = arith.constant 0 : index
    %14 = vector.load %arg7[%c0_11, %c0_12] : memref<128x128xbf16, #tpu.memory_space<vmem>>, vector<128x128xbf16>
    %cst_13 = arith.constant dense<0.000000e+00> : vector<128x128xf32>
    %15 = tpu.matmul %8, %14, %cst_13 {dimension_numbers = #tpu.dot_dimension_numbers<[1], [0], [0], [1], [0, 0, 1, 1], [], []>} : vector<128x128xbf16>, vector<128x128xbf16>, vector<128x128xf32> -> vector<128x128xf32>
    %c0_14 = arith.constant 0 : index
    %c0_15 = arith.constant 0 : index
    %16 = vector.load %arg8[%c0_14, %c0_15] : memref<1x128xf32, #tpu.memory_space<vmem>>, vector<1x128xf32>
    %17 = vector.broadcast %16 : vector<1x128xf32> to vector<128x128xf32>
    %18 = arith.addf %15, %17 : vector<128x128xf32>
    %c0_16 = arith.constant 0 : index
    %c0_17 = arith.constant 0 : index
    %19 = vector.load %arg2[%c0_16, %c0_17] : memref<128x128xf32, #tpu.memory_space<vmem>>, vector<128x128xf32>
    %cst_18 = arith.constant 5.000000e-01 : f32
    %20 = vector.broadcast %cst_18 : f32 to vector<128x128xf32>
    %21 = arith.mulf %20, %18 : vector<128x128xf32>
    %22 = math.exp %21 : vector<128x128xf32>
    %23 = arith.mulf %19, %22 : vector<128x128xf32>
    %24 = arith.addf %23, %13 : vector<128x128xf32>
    %25 = arith.truncf %24 : vector<128x128xf32> to vector<128x128xbf16>
    %c0_19 = arith.constant 0 : index
    %c0_20 = arith.constant 0 : index
    %26 = vector.load %arg9[%c0_19, %c0_20] : memref<128x128xbf16, #tpu.memory_space<vmem>>, vector<128x128xbf16>
    %cst_21 = arith.constant dense<0.000000e+00> : vector<128x128xf32>
    %27 = tpu.matmul %25, %26, %cst_21 {dimension_numbers = #tpu.dot_dimension_numbers<[1], [0], [0], [1], [0, 0, 1, 1], [], []>} : vector<128x128xbf16>, vector<128x128xbf16>, vector<128x128xf32> -> vector<128x128xf32>
    %c0_22 = arith.constant 0 : index
    %c0_23 = arith.constant 0 : index
    %28 = vector.load %arg10[%c0_22, %c0_23] : memref<1x128xf32, #tpu.memory_space<vmem>>, vector<1x128xf32>
    %29 = vector.broadcast %28 : vector<1x128xf32> to vector<128x128xf32>
    %30 = arith.addf %27, %29 : vector<128x128xf32>
    %cst_24 = arith.constant 0.000000e+00 : f32
    %31 = vector.broadcast %cst_24 : f32 to vector<128x128xf32>
    %32 = arith.maximumf %30, %31 : vector<128x128xf32>
    %33 = arith.truncf %32 : vector<128x128xf32> to vector<128x128xbf16>
    %c0_25 = arith.constant 0 : index
    %c0_26 = arith.constant 0 : index
    %34 = vector.load %arg11[%c0_25, %c0_26] : memref<128x256xbf16, #tpu.memory_space<vmem>>, vector<128x256xbf16>
    %cst_27 = arith.constant dense<0.000000e+00> : vector<128x256xf32>
    %35 = tpu.matmul %33, %34, %cst_27 {dimension_numbers = #tpu.dot_dimension_numbers<[1], [0], [0], [1], [0, 0, 1, 1], [], []>} : vector<128x128xbf16>, vector<128x256xbf16>, vector<128x256xf32> -> vector<128x256xf32>
    %c0_28 = arith.constant 0 : index
    %c0_29 = arith.constant 0 : index
    %36 = vector.load %arg12[%c0_28, %c0_29] : memref<1x256xf32, #tpu.memory_space<vmem>>, vector<1x256xf32>
    %37 = vector.broadcast %36 : vector<1x256xf32> to vector<128x256xf32>
    %38 = arith.addf %35, %37 : vector<128x256xf32>
    %cst_30 = arith.constant 5.000000e-01 : f32
    %39 = vector.broadcast %cst_30 : f32 to vector<128x256xf32>
    %40 = arith.mulf %39, %38 : vector<128x256xf32>
    %41 = math.tanh %40 : vector<128x256xf32>
    %cst_31 = arith.constant 5.000000e-01 : f32
    %42 = vector.broadcast %cst_31 : f32 to vector<128x256xf32>
    %43 = arith.mulf %42, %41 : vector<128x256xf32>
    %cst_32 = arith.constant 5.000000e-01 : f32
    %44 = vector.broadcast %cst_32 : f32 to vector<128x256xf32>
    %45 = arith.addf %43, %44 : vector<128x256xf32>
    %46 = arith.truncf %45 : vector<128x256xf32> to vector<128x256xbf16>
    %c0_33 = arith.constant 0 : index
    %c0_34 = arith.constant 0 : index
    %47 = vector.load %arg13[%c0_33, %c0_34] : memref<128x256xbf16, #tpu.memory_space<vmem>>, vector<128x256xbf16>
    tpu.vector_store %arg13[%c0_33, %c0_34], %46 {strides = array<i32>} : memref<128x256xbf16, #tpu.memory_space<vmem>>, vector<128x256xbf16>,
    %c0_35 = arith.constant 0 : index
    %c0_36 = arith.constant 0 : index
    %48 = vector.load %arg14[%c0_35, %c0_36] : memref<128x128xf32, #tpu.memory_space<vmem>>, vector<128x128xf32>
    tpu.vector_store %arg14[%c0_35, %c0_36], %13 {strides = array<i32>} : memref<128x128xf32, #tpu.memory_space<vmem>>, vector<128x128xf32>,
    return
  }
  func.func @transform_0(%arg0: i32) -> (i32, i32) {
    %c0_i32 = arith.constant 0 : i32
    %c0_i32_0 = arith.constant 0 : i32
    return %arg0, %c0_i32 : i32, i32
  }
  func.func @transform_1(%arg0: i32) -> (i32, i32) {
    %c0_i32 = arith.constant 0 : i32
    %c0_i32_0 = arith.constant 0 : i32
    return %arg0, %c0_i32 : i32, i32
  }
  func.func @transform_2(%arg0: i32) -> (i32, i32) {
    %c0_i32 = arith.constant 0 : i32
    %c0_i32_0 = arith.constant 0 : i32
    %c0_i32_1 = arith.constant 0 : i32
    return %c0_i32, %c0_i32_0 : i32, i32
  }
  func.func @transform_3(%arg0: i32) -> (i32, i32) {
    %c0_i32 = arith.constant 0 : i32
    %c0_i32_0 = arith.constant 0 : i32
    %c0_i32_1 = arith.constant 0 : i32
    return %c0_i32, %c0_i32_0 : i32, i32
  }
  func.func @transform_4(%arg0: i32) -> (i32, i32) {
    %c0_i32 = arith.constant 0 : i32
    %c0_i32_0 = arith.constant 0 : i32
    %c0_i32_1 = arith.constant 0 : i32
    return %c0_i32, %c0_i32_0 : i32, i32
  }
  func.func @transform_5(%arg0: i32) -> (i32, i32) {
    %c0_i32 = arith.constant 0 : i32
    %c0_i32_0 = arith.constant 0 : i32
    %c0_i32_1 = arith.constant 0 : i32
    return %c0_i32, %c0_i32_0 : i32, i32
  }
  func.func @transform_6(%arg0: i32) -> (i32, i32) {
    %c0_i32 = arith.constant 0 : i32
    %c0_i32_0 = arith.constant 0 : i32
    %c0_i32_1 = arith.constant 0 : i32
    return %c0_i32, %c0_i32_0 : i32, i32
  }
  func.func @transform_7(%arg0: i32) -> (i32, i32) {
    %c0_i32 = arith.constant 0 : i32
    %c0_i32_0 = arith.constant 0 : i32
    %c0_i32_1 = arith.constant 0 : i32
    return %c0_i32, %c0_i32_0 : i32, i32
  }
  func.func @transform_8(%arg0: i32) -> (i32, i32) {
    %c0_i32 = arith.constant 0 : i32
    %c0_i32_0 = arith.constant 0 : i32
    %c0_i32_1 = arith.constant 0 : i32
    return %c0_i32, %c0_i32_0 : i32, i32
  }
  func.func @transform_9(%arg0: i32) -> (i32, i32) {
    %c0_i32 = arith.constant 0 : i32
    %c0_i32_0 = arith.constant 0 : i32
    %c0_i32_1 = arith.constant 0 : i32
    return %c0_i32, %c0_i32_0 : i32, i32
  }
  func.func @transform_10(%arg0: i32) -> (i32, i32) {
    %c0_i32 = arith.constant 0 : i32
    %c0_i32_0 = arith.constant 0 : i32
    %c0_i32_1 = arith.constant 0 : i32
    return %c0_i32, %c0_i32_0 : i32, i32
  }
  func.func @transform_11(%arg0: i32) -> (i32, i32) {
    %c0_i32 = arith.constant 0 : i32
    %c0_i32_0 = arith.constant 0 : i32
    %c0_i32_1 = arith.constant 0 : i32
    return %c0_i32, %c0_i32_0 : i32, i32
  }
  func.func @transform_12(%arg0: i32) -> (i32, i32) {
    %c0_i32 = arith.constant 0 : i32
    %c0_i32_0 = arith.constant 0 : i32
    return %arg0, %c0_i32 : i32, i32
  }
  func.func @transform_13(%arg0: i32) -> (i32, i32) {
    %c0_i32 = arith.constant 0 : i32
    %c0_i32_0 = arith.constant 0 : i32
    return %arg0, %c0_i32 : i32, i32
  }
}

</mosaic_0001>

<bundles_post_ra>
// kernel: tpu_custom_call.1
= control target key start
LH: loop header
LB: loop body
LE: loop exit
PB: predicated region body
PF: predicated region fallthrough
CT: control target
= control target key end

     0   :  { %19 = vsyncpa [#allocation3], 0  ;;  %s2420_s0 = inlined_call_operand.hbm [shape: bf16[8,256], index: 0, kind: input, shape index: {}]   ;;  %s2421_s1 = inlined_call_operand.hbm [shape: f32[8,128], index: 1, kind: input, shape index: {}]   ;;  %s2422_s2 = inlined_call_operand.hbm [shape: bf16[256,128], index: 2, kind: input, shape index: {}]   ;;  %s2423_s3 = inlined_call_operand.vmem [shape: f32[1,128], index: 3, kind: input, shape index: {}]   ;;  %s2424_s4 = inlined_call_operand.hbm [shape: bf16[128,128], index: 4, kind: input, shape index: {}]   ;;  %s2425_s5 = inlined_call_operand.vmem [shape: f32[1,128], index: 5, kind: input, shape index: {}]   ;;  %s2426_s6 = inlined_call_operand.hbm [shape: bf16[128,128], index: 6, kind: input, shape index: {}]   ;;  %s2427_s7 = inlined_call_operand.vmem [shape: f32[1,128], index: 7, kind: input, shape index: {}]   ;;  %s2428_s8 = inlined_call_operand.hbm [shape: bf16[128,128], index: 8, kind: input, shape index: {}]   ;;  %s2429_s9 = inlined_call_operand.vmem [shape: f32[1,128], index: 9, kind: input, shape index: {}]   ;;  %s2430_s10 = inlined_call_operand.hbm [shape: bf16[128,256], index: 10, kind: input, shape index: {}]   ;;  %s2431_s11 = inlined_call_operand.vmem [shape: f32[1,256], index: 11, kind: input, shape index: {}]   ;;  %s2432_s12 = inlined_call_operand.hbm [shape: bf16[8,256], index: 12, kind: output, shape index: {0}]   ;;  %s2433_s13 = inlined_call_operand.hbm [shape: f32[8,128], index: 13, kind: output, shape index: {1}]  }
   0x1   :  { %20 = vsyncpa [#allocation6], 0 }
   0x2   :  { %21 = vsyncpa [#allocation9], 0 }
   0x3   :  { %22 = vsyncpa [#allocation12], 0 }
   0x4   :  { %23 = vsyncpa [#allocation4], 0 }
   0x5   :  { %24 = vsyncpa [#allocation16], 0 }
   0x6   :  { %28 = vsyncadd [#allocation3], 1920  ;;  %s29_s27 = sshll.u32 %s2420_s0, 4  ;;  %s2124_s28 = smov [#allocation2]   ;;  %s30_s27 = int_to_ptr.hbm [resolvable:$true] %s29_s27 }
   0x7   :  { %s31_s29 = sshll.u32 %s2124_s28, 4  ;;  %s2125_s30 = smov 128   ;;  %s32_s29 = int_to_ptr.vmem [resolvable:$true] %s31_s29 }
   0x8   :  { %s2126_s14 = smov 8  }
   0x9   :  { %37 = dma.hbm_to_vmem [thread:$0]  %s30_s27, 128, %s32_s29, [#allocation3], %s2125_s30, %s2125_s30, %s2126_s14  }
   0xa   :  { %41 = vsyncadd [#allocation6], 1920  ;;  %s42_s17 = sshll.u32 %s2421_s1, 4  ;;  %s2127_s18 = smov [#allocation5]   ;;  %s43_s17 = int_to_ptr.hbm [resolvable:$true] %s42_s17 }
   0xb   :  { %s44_s19 = sshll.u32 %s2127_s18, 4  ;;  %s70_s21 = sshll.u32 %s2424_s4, 4  ;;  %s45_s19 = int_to_ptr.vmem [resolvable:$true] %s44_s19  ;;  %s71_s21 = int_to_ptr.hbm [resolvable:$true] %s70_s21 }
   0xc   :  { %50 = dma.hbm_to_vmem [thread:$0]  %s43_s17, 128, %s45_s19, [#allocation6], %s2125_s30, %s2125_s30, %s2126_s14  }
   0xd   :  { %s2128_s22 = smov [#allocation8]   ;;  %s100_s26 = sshll.u32 %s2428_s8, 4  ;;  %s101_s26 = int_to_ptr.hbm [resolvable:$true] %s100_s26 }
   0xe   :  { %s72_s23 = sshll.u32 %s2128_s22, 4  ;;  %s2129_s1 = smov 64   ;;  %s73_s23 = int_to_ptr.vmem [resolvable:$true] %s72_s23 }
   0xf   :  { %s2130_s27 = smov 4   ;;  %s55_s15 = sshll.u32 %s2422_s2, 4  ;;  %s56_s15 = int_to_ptr.hbm [resolvable:$true] %s55_s15 }
  0x10   :  { %78 = dma.hbm_to_vmem [thread:$0]  %s71_s21, 1024, %s73_s23, [#allocation9], %s2129_s1, %s2129_s1, %s2130_s27  }
  0x11   :  { %s2131_s16 = smov [#allocation11]   ;;  %s2132_s4 = smov [#allocation7]  }
  0x12   :  { %s102_s17 = sshll.u32 %s2131_s16, 4  ;;  %s57_s18 = sshll.u32 %s2132_s4, 4  ;;  %s103_s17 = int_to_ptr.vmem [resolvable:$true] %s102_s17  ;;  %s58_s18 = int_to_ptr.vmem [resolvable:$true] %s57_s18 }
  0x13   :  { %108 = dma.hbm_to_vmem [thread:$0]  %s101_s26, 1024, %s103_s17, [#allocation12], %s2129_s1, %s2129_s1, %s2130_s27  }
  0x14   :  { %s85_s8 = sshll.u32 %s2426_s6, 4  ;;  %s115_s22 = sshll.u32 %s2430_s10, 4  ;;  %s86_s8 = int_to_ptr.hbm [resolvable:$true] %s85_s8  ;;  %s116_s22 = int_to_ptr.hbm [resolvable:$true] %s115_s22 }
  0x15   :  { %63 = dma.hbm_to_vmem [thread:$0]  %s56_s15, 2048, %s58_s18, [#allocation6], %s2129_s1, %s2129_s1, %s2130_s27  }
  0x16   :  { %s2133_s23 = smov [#allocation10]   ;;  %s2134_s24 = smov [#allocation13]  }
  0x17   :  { %s87_s2 = sshll.u32 %s2133_s23, 4  ;;  %s117_s25 = sshll.u32 %s2134_s24, 4  ;;  %s88_s2 = int_to_ptr.vmem [resolvable:$true] %s87_s2  ;;  %s118_s25 = int_to_ptr.vmem [resolvable:$true] %s117_s25 }
  0x18   :  { %93 = dma.hbm_to_vmem [thread:$0]  %s86_s8, 1024, %s88_s2, [#allocation9], %s2129_s1, %s2129_s1, %s2130_s27  }
  0x19   :  { %123 = dma.hbm_to_vmem [thread:$0]  %s116_s22, 2048, %s118_s25, [#allocation12], %s2125_s30, %s2125_s30, %s2126_s14  }
  0x1a   :  { %2112 = dma.done.wait [#allocation3], 2048  }
  0x1b   :  { %2113 = vsyncadd [#allocation3], 4294965248 }
  0x1c   :  { %2114 = dma.done.wait [#allocation6], 4096  }
  0x1d   :  { %2115 = vsyncadd [#allocation6], 4294963200 }
  0x1e   :  { %2116 = dma.done.wait [#allocation9], 2048  }
  0x1f   :  { %2117 = vsyncadd [#allocation9], 4294965248 }
  0x20   :  { %2118 = dma.done.wait [#allocation12], 3072  }
  0x21   :  { %2119 = vsyncadd [#allocation12], 4294964224  ;;  %v1710_v0 = vld [vmem:[#allocation7 + $0x38] sm:$0xff]  ;;  %v1709_v1 = vld [vmem:[#allocation7 + $0x30] sm:$0xff] }
  0x22   :  { %382 = vmatpush.bf16.msra.mxu0 %v1710_v0  ;;  %1759 = vmatpush.bf16.msra.mxu3 %v1710_v0  ;;  %v1718_v2 = vld [vmem:[#allocation7 + $0x78] sm:$0xff]  ;;  %v1708_v3 = vld [vmem:[#allocation7 + $0x28] sm:$0xff]  ;;  %v1717_v4 = vld [vmem:[#allocation7 + $0x70] sm:$0xff] }
  0x23   :  { %1767 = vmatpush.bf16.msra.mxu1 %v1718_v2  ;;  %v1707_v5 = vld [vmem:[#allocation7 + $0x20] sm:$0xff]  ;;  %v1716_v6 = vld [vmem:[#allocation7 + $0x68] sm:$0xff]  ;;  %v1706_v7 = vld [vmem:[#allocation7 + $0x18] sm:$0xff] }
  0x24   :  { %v1715_v8 = vld [vmem:[#allocation7 + $0x60] sm:$0xff]  ;;  %v1705_v9 = vld [vmem:[#allocation7 + $0x10] sm:$0xff]  ;;  %v1714_v10 = vld [vmem:[#allocation7 + $0x58] sm:$0xff] }
  0x25   :  { %v1704_v11 = vld [vmem:[#allocation7 + $0x8] sm:$0xff]  ;;  %v1713_v12 = vld [vmem:[#allocation7 + $0x50] sm:$0xff]  ;;  %v1703_v13 = vld [vmem:[#allocation7] sm:$0xff] }
  0x26   :  { %383 = vmatpush.bf16.msra.mxu0 %v1709_v1  ;;  %1760 = vmatpush.bf16.msra.mxu3 %v1709_v1  ;;  %v1401_v14 = vld [vmem:[#allocation2] sm:$0xf]  ;;  %v1688_v15 = vld [vmem:[#allocation2 + $0x4] sm:$0xf0]  ;;  %v1409_v22 = vld [vmem:[#allocation2 + $0x10] sm:$0xf] }
  0x27   :  { %1768 = vmatpush.bf16.msra.mxu1 %v1717_v4  ;;  %v1712_v16 = vld [vmem:[#allocation7 + $0x48] sm:$0xff]  ;;  %v1402_v17 = vor.u32 %v1688_v15, %v1401_v14  ;;  %v1711_v18 = vld [vmem:[#allocation7 + $0x40] sm:$0xff]  ;;  %v1690_v23 = vld [vmem:[#allocation2 + $0x14] sm:$0xf0] }
  0x28   :  { %v1417_v19 = vld [vmem:[#allocation2 + $0x20] sm:$0xf]  ;;  %v1692_v20 = vld [vmem:[#allocation2 + $0x24] sm:$0xf0]  ;;  %v1410_v24 = vor.u32 %v1690_v23, %v1409_v22  ;;  %v1691_v25 = vld [vmem:[#allocation2 + $0x24] sm:$0xf] }
  0x29   :  { %v1418_v21 = vor.u32 %v1692_v20, %v1417_v19  ;;  %v1419_v26 = vld [vmem:[#allocation2 + $0x28] sm:$0xf0]  ;;  %v1425_v28 = vld [vmem:[#allocation2 + $0x30] sm:$0xf]  ;;  %v1694_v29 = vld [vmem:[#allocation2 + $0x34] sm:$0xf0] }
  0x2a   :  { %384 = vmatpush.bf16.msra.mxu0 %v1708_v3  ;;  %1761 = vmatpush.bf16.msra.mxu3 %v1708_v3  ;;  %v1422_v27 = vor.u32 %v1691_v25, %v1419_v26  ;;  %v1426_v30 = vor.u32 %v1694_v29, %v1425_v28  ;;  %v1734_v31 = vld [vmem:[#allocation10 + $0x38] sm:$0xff]  ;;  %v1733_v32 = vld [vmem:[#allocation10 + $0x30] sm:$0xff]  ;;  %v1687_v33 = vld [vmem:[#allocation2 + $0x4] sm:$0xf] }
  0x2b   :  { %1769 = vmatpush.bf16.msra.mxu1 %v1716_v6  ;;  %v1403_v34 = vld [vmem:[#allocation2 + $0x8] sm:$0xf0]  ;;  %v1693_v35 = vld [vmem:[#allocation2 + $0x34] sm:$0xf]  ;;  %v1427_v36 = vld [vmem:[#allocation2 + $0x38] sm:$0xf0] }
  0x2c   :  { %v1406_v37 = vor.u32 %v1687_v33, %v1403_v34  ;;  %v1430_v38 = vor.u32 %v1693_v35, %v1427_v36  ;;  %v1433_v39 = vld [vmem:[#allocation2 + $0x40] sm:$0xf]  ;;  %v1696_v40 = vld [vmem:[#allocation2 + $0x44] sm:$0xf0]  ;;  %v1689_v43 = vld [vmem:[#allocation2 + $0x14] sm:$0xf] }
  0x2d   :  { %v1434_v41 = vor.u32 %v1696_v40, %v1433_v39  ;;  %v1732_v42 = vld [vmem:[#allocation10 + $0x28] sm:$0xff]  ;;  %v1411_v44 = vld [vmem:[#allocation2 + $0x18] sm:$0xf0]  ;;  %v1695_v45 = vld [vmem:[#allocation2 + $0x44] sm:$0xf] }
  0x2e   :  { %385 = vmatpush.bf16.msra.mxu0 %v1707_v5  ;;  %1762 = vmatpush.bf16.msra.mxu3 %v1707_v5  ;;  %v1435_v46 = vld [vmem:[#allocation2 + $0x48] sm:$0xf0]  ;;  %v1414_v47 = vor.u32 %v1689_v43, %v1411_v44  ;;  %v1441_v49 = vld [vmem:[#allocation2 + $0x50] sm:$0xf]  ;;  %v1698_v50 = vld [vmem:[#allocation2 + $0x54] sm:$0xf0] }
  0x2f   :  { %1770 = vmatpush.bf16.msra.mxu1 %v1715_v8  ;;  %v1438_v48 = vor.u32 %v1695_v45, %v1435_v46  ;;  %v1442_v51 = vor.u32 %v1698_v50, %v1441_v49  ;;  %v1731_v52 = vld [vmem:[#allocation10 + $0x20] sm:$0xff]  ;;  %v1730_v53 = vld [vmem:[#allocation10 + $0x18] sm:$0xff]  ;;  %v1697_v54 = vld [vmem:[#allocation2 + $0x54] sm:$0xf] }
  0x30   :  { %v1443_v55 = vld [vmem:[#allocation2 + $0x58] sm:$0xf0]  ;;  %v1449_v57 = vld [vmem:[#allocation2 + $0x60] sm:$0xf]  ;;  %v1700_v58 = vld [vmem:[#allocation2 + $0x64] sm:$0xf0] }
  0x31   :  { %v1446_v56 = vor.u32 %v1697_v54, %v1443_v55  ;;  %v1450_v59 = vor.u32 %v1700_v58, %v1449_v57  ;;  %v1699_v60 = vld [vmem:[#allocation2 + $0x64] sm:$0xf]  ;;  %v1451_v61 = vld [vmem:[#allocation2 + $0x68] sm:$0xf0]  ;;  %v1457_v63 = vld [vmem:[#allocation2 + $0x70] sm:$0xf] }
  0x32   :  { %386 = vmatpush.bf16.msra.mxu0 %v1706_v7  ;;  %1763 = vmatpush.bf16.msra.mxu3 %v1706_v7  ;;  %v1454_v62 = vor.u32 %v1699_v60, %v1451_v61  ;;  %v1702_v0 = vld [vmem:[#allocation2 + $0x74] sm:$0xf0]  ;;  %v1459_v3 = vld [vmem:[#allocation2 + $0x78] sm:$0xf0]  ;;  %v1729_v5 = vld [vmem:[#allocation10 + $0x10] sm:$0xff] }
  0x33   :  { %1771 = vmatpush.bf16.msra.mxu1 %v1714_v10  ;;  %v1458_v1 = vor.u32 %v1702_v0, %v1457_v63  ;;  %v1725_v7 = vld [vmem:[#allocation8 + $0x30] sm:$0xff]  ;;  %v1727_v14 = vld [vmem:[#allocation10] sm:$0xff]  ;;  %v1720_v15 = vld [vmem:[#allocation8 + $0x8] sm:$0xff] }
  0x34   :  { %v2240_v19 = vld [vmem:[%s2423_s3] ss:$0 sm:$0xff] }
  0x36   :  { %387 = vmatpush.bf16.msra.mxu0 %v1705_v9  ;;  %1764 = vmatpush.bf16.msra.mxu3 %v1705_v9  ;;  %v1724_v9 = vld [vmem:[#allocation8 + $0x28] sm:$0xff] }
  0x37   :  { %1772 = vmatpush.bf16.msra.mxu1 %v1713_v12 }
  0x3a   :  { %388 = vmatpush.bf16.msra.mxu0 %v1704_v11  ;;  %1765 = vmatpush.bf16.msra.mxu3 %v1704_v11  ;;  %v1722_v11 = vld [vmem:[#allocation8 + $0x18] sm:$0xff] }
  0x3b   :  { %1773 = vmatpush.bf16.msra.mxu1 %v1712_v16 }
  0x3e   :  { %389 = vmatpush.bf16.msra.mxu0 %v1703_v13  ;;  %1766 = vmatpush.bf16.msra.mxu3 %v1703_v13  ;;  %v1721_v13 = vld [vmem:[#allocation8 + $0x10] sm:$0xff] }
  0x3f   :  { %1774 = vmatpush.bf16.msra.mxu1 %v1711_v18 }
  0x41   :  { %390 = vmatmul.bf16.vlgmr.msra.gmra.mxu0 %v1402_v17  ;;  %400 = vmatmul.bf16.vlgmr.msra.gmra.mxu3 %v1418_v21  ;;  %v1719_v17 = vld [vmem:[#allocation8] sm:$0xff] }
  0x42   :  { %431 = vmatpush.bf16.msrb.mxu0 %v1718_v2  ;;  %449 = vmatmul.bf16.vlgmr.msra.gmra.mxu1 %v1422_v27  ;;  %v1701_v2 = vld [vmem:[#allocation2 + $0x74] sm:$0xf] }
  0x43   :  { %689 = vmatpush.bf16.msrb.mxu3 %v1734_v31 }
  0x46   :  { %432 = vmatpush.bf16.msrb.mxu0 %v1717_v4  ;;  %v1462_v4 = vor.u32 %v1701_v2, %v1459_v3 }
  0x47   :  { %690 = vmatpush.bf16.msrb.mxu3 %v1733_v32 }
  0x4a   :  { %433 = vmatpush.bf16.msrb.mxu0 %v1716_v6  ;;  %v1726_v6 = vld [vmem:[#allocation8 + $0x38] sm:$0xff] }
  0x4b   :  { %691 = vmatpush.bf16.msrb.mxu3 %v1732_v42  ;;  %1775 = vmatpush.bf16.msra.mxu2 %v1726_v6 }
  0x4e   :  { %434 = vmatpush.bf16.msrb.mxu0 %v1715_v8  ;;  %v1728_v8 = vld [vmem:[#allocation10 + $0x8] sm:$0xff] }
  0x4f   :  { %692 = vmatpush.bf16.msrb.mxu3 %v1731_v52  ;;  %1776 = vmatpush.bf16.msra.mxu2 %v1725_v7 }
  0x51   :  { %395 = vmatmul.bf16.gmra.mxu0 %v1410_v24  ;;  %405 = vmatmul.bf16.gmra.mxu3 %v1426_v30 }
  0x52   :  { %435 = vmatpush.bf16.msrb.mxu0 %v1714_v10  ;;  %454 = vmatmul.bf16.gmra.mxu1 %v1430_v38  ;;  %v1723_v10 = vld [vmem:[#allocation8 + $0x20] sm:$0xff] }
  0x53   :  { %693 = vmatpush.bf16.msrb.mxu3 %v1730_v53  ;;  %1777 = vmatpush.bf16.msra.mxu2 %v1724_v9 }
  0x56   :  { %436 = vmatpush.bf16.msrb.mxu0 %v1713_v12 }
  0x57   :  { %694 = vmatpush.bf16.msrb.mxu3 %v1729_v5  ;;  %1778 = vmatpush.bf16.msra.mxu2 %v1723_v10 }
  0x5a   :  { %437 = vmatpush.bf16.msrb.mxu0 %v1712_v16 }
  0x5b   :  { %695 = vmatpush.bf16.msrb.mxu3 %v1728_v8  ;;  %1779 = vmatpush.bf16.msra.mxu2 %v1722_v11 }
  0x5e   :  { %438 = vmatpush.bf16.msrb.mxu0 %v1711_v18 }
  0x5f   :  { %1780 = vmatpush.bf16.msra.mxu2 %v1721_v13  ;;  %696 = vmatpush.bf16.msrb.mxu3 %v1727_v14 }
  0x61   :  { %439 = vmatmul.bf16.vlgmr.msrb.gmra.mxu0 %v1406_v37  ;;  %410 = vmatmul.bf16.gmra.mxu3 %v1434_v41 }
  0x62   :  { %459 = vmatmul.bf16.gmra.mxu1 %v1438_v48  ;;  %572 = vmatpush.bf16.msra.mxu0 %v1726_v6 }
  0x63   :  { %1781 = vmatpush.bf16.msra.mxu2 %v1720_v15 }
  0x66   :  { %573 = vmatpush.bf16.msra.mxu0 %v1725_v7 }
  0x67   :  { %1782 = vmatpush.bf16.msra.mxu2 %v1719_v17 }
  0x6a   :  { %574 = vmatpush.bf16.msra.mxu0 %v1724_v9 }
  0x6e   :  { %575 = vmatpush.bf16.msra.mxu0 %v1723_v10 }
  0x71   :  { %444 = vmatmul.bf16.gmra.mxu0 %v1414_v47  ;;  %415 = vmatmul.bf16.gmra.mxu3 %v1442_v51 }
  0x72   :  { %464 = vmatmul.bf16.gmra.mxu1 %v1446_v56  ;;  %576 = vmatpush.bf16.msra.mxu0 %v1722_v11 }
  0x76   :  { %577 = vmatpush.bf16.msra.mxu0 %v1721_v13 }
  0x7a   :  { %578 = vmatpush.bf16.msra.mxu0 %v1720_v15 }
  0x7e   :  { %579 = vmatpush.bf16.msra.mxu0 %v1719_v17 }
  0x81   :  { %420 = vmatmul.bf16.gmra.mxu3 %v1450_v59 }
  0x82   :  { %469 = vmatmul.bf16.gmra.mxu1 %v1454_v62 }
  0x91   :  { %425 = vmatmul.bf16.gmra.mxu3 %v1458_v1 }
  0x92   :  { %474 = vmatmul.bf16.gmra.mxu1 %v1462_v4 }
  0xbe   :  { %v391_v12 = vpop.f32.mrf.mxu0 }
  0xbf   :  { %v450_v21 = vpop.f32.mrf.mxu1  ;;  %v392_v36 = vadd.f32 %v2240_v19, %v391_v12 }
  0xc4   :  { %v401_v18 = vpop.f32.mrf.mxu3 }
  0xc5   :  { %v402_v22 = vadd.f32 %v2240_v19, %v401_v18 }
  0xc6   :  { %v393_v16 = vpop.f32.mrf.mxu0 }
  0xc7   :  { %v451_v23 = vadd.f32 %v450_v21, %v402_v22  ;;  %v452_v27 = vpop.f32.mrf.mxu1  ;;  %v394_v40 = vadd.f32 %v2240_v19, %v393_v16 }
  0xc9   :  { %v484_v28 = vmax.f32 %v451_v23, 0.0 }
  0xcc   :  { %v403_v24 = vpop.f32.mrf.mxu3 }
  0xcd   :  { %v404_v25 = vadd.f32 %v2240_v19, %v403_v24 }
  0xce   :  { %v396_v20 = vpop.f32.mrf.mxu0 }
  0xcf   :  { %v453_v29 = vadd.f32 %v452_v27, %v404_v25  ;;  %v455_v34 = vpop.f32.mrf.mxu1  ;;  %v397_v56 = vadd.f32 %v2240_v19, %v396_v20 }
  0xd1   :  { %v485_v30 = vmax.f32 %v453_v29, 0.0 }
  0xd3   :  { %v498_v32 = vpack.c.bf16 %v485_v30, %v484_v28 }
  0xd4   :  { %v406_v31 = vpop.f32.mrf.mxu3 }
  0xd5   :  { %590 = vmatmul.bf16.vlgmr.msra.gmra.mxu2 %v498_v32  ;;  %v407_v35 = vadd.f32 %v2240_v19, %v406_v31 }
  0xd6   :  { %v398_v26 = vpop.f32.mrf.mxu0 }
  0xd7   :  { %v456_v37 = vadd.f32 %v455_v34, %v407_v35  ;;  %v457_v43 = vpop.f32.mrf.mxu1  ;;  %v399_v60 = vadd.f32 %v2240_v19, %v398_v26 }
  0xd9   :  { %v486_v45 = vmax.f32 %v456_v37, 0.0 }
  0xdc   :  { %v408_v38 = vpop.f32.mrf.mxu3 }
  0xdd   :  { %v409_v39 = vadd.f32 %v2240_v19, %v408_v38 }
  0xde   :  { %v440_v33 = vpop.f32.mrf.mxu0 }
  0xdf   :  { %v441_v41 = vadd.f32 %v440_v33, %v392_v36  ;;  %v458_v46 = vadd.f32 %v457_v43, %v409_v39  ;;  %v460_v54 = vpop.f32.mrf.mxu1  ;;  %v1741_v43 = vld [vmem:[#allocation11 + $0x30] sm:$0xff] }
  0xe1   :  { %v480_v47 = vmax.f32 %v441_v41, 0.0  ;;  %v487_v49 = vmax.f32 %v458_v46, 0.0  ;;  %v1738_v46 = vld [vmem:[#allocation11 + $0x18] sm:$0xff] }
  0xe3   :  { %v499_v52 = vpack.c.bf16 %v487_v49, %v486_v45  ;;  %v1739_v45 = vld [vmem:[#allocation11 + $0x20] sm:$0xff] }
  0xe4   :  { %v411_v51 = vpop.f32.mrf.mxu3  ;;  %v2261_v49 = vld [vmem:[%s2425_s5] ss:$0 sm:$0xff] }
  0xe5   :  { %595 = vmatmul.bf16.gmra.mxu2 %v499_v52  ;;  %v412_v55 = vadd.f32 %v2240_v19, %v411_v51  ;;  %v1735_v51 = vld [vmem:[#allocation11] sm:$0xff] }
  0xe6   :  { %v442_v42 = vpop.f32.mrf.mxu0 }
  0xe7   :  { %v443_v44 = vadd.f32 %v442_v42, %v394_v40  ;;  %v461_v57 = vadd.f32 %v460_v54, %v412_v55  ;;  %v462_v63 = vpop.f32.mrf.mxu1  ;;  %v1742_v42 = vld [vmem:[#allocation11 + $0x38] sm:$0xff] }
  0xe8   :  { %910 = vmatpush.bf16.msrb.mxu0 %v1742_v42 }
  0xe9   :  { %v481_v48 = vmax.f32 %v443_v44, 0.0  ;;  %v488_v1 = vmax.f32 %v461_v57, 0.0  ;;  %v1740_v44 = vld [vmem:[#allocation11 + $0x28] sm:$0xff] }
  0xeb   :  { %v496_v50 = vpack.c.bf16 %v481_v48, %v480_v47  ;;  %v1736_v48 = vld [vmem:[#allocation11 + $0x8] sm:$0xff] }
  0xec   :  { %v413_v58 = vpop.f32.mrf.mxu3  ;;  %911 = vmatpush.bf16.msrb.mxu0 %v1741_v43 }
  0xed   :  { %580 = vmatmul.bf16.vlgmr.msra.gmra.mxu0 %v496_v50  ;;  %697 = vmatmul.bf16.vlgmr.msrb.gmra.mxu3 %v496_v50  ;;  %v414_v59 = vadd.f32 %v2240_v19, %v413_v58 }
  0xee   :  { %v445_v53 = vpop.f32.mrf.mxu0 }
  0xef   :  { %v446_v61 = vadd.f32 %v445_v53, %v397_v56  ;;  %v463_v2 = vadd.f32 %v462_v63, %v414_v59  ;;  %v465_v9 = vpop.f32.mrf.mxu1  ;;  %v2275_v56 = vld [vmem:[%s2427_s7] ss:$0 sm:$0xff] }
  0xf0   :  { %912 = vmatpush.bf16.msrb.mxu0 %v1740_v44 }
  0xf1   :  { %v482_v3 = vmax.f32 %v446_v61, 0.0  ;;  %v489_v5 = vmax.f32 %v463_v2, 0.0 }
  0xf3   :  { %v500_v8 = vpack.c.bf16 %v489_v5, %v488_v1 }
  0xf4   :  { %v416_v7 = vpop.f32.mrf.mxu3  ;;  %913 = vmatpush.bf16.msrb.mxu0 %v1739_v45 }
  0xf5   :  { %600 = vmatmul.bf16.gmra.mxu2 %v500_v8  ;;  %v417_v10 = vadd.f32 %v2240_v19, %v416_v7 }
  0xf6   :  { %v447_v62 = vpop.f32.mrf.mxu0 }
  0xf7   :  { %v448_v0 = vadd.f32 %v447_v62, %v399_v60  ;;  %v466_v11 = vadd.f32 %v465_v9, %v417_v10  ;;  %v467_v14 = vpop.f32.mrf.mxu1 }
  0xf8   :  { %914 = vmatpush.bf16.msrb.mxu0 %v1738_v46 }
  0xf9   :  { %v483_v4 = vmax.f32 %v448_v0, 0.0  ;;  %v490_v15 = vmax.f32 %v466_v11, 0.0  ;;  %v738_v11 = vld [vmem:[#allocation5] sm:$0xff] }
  0xfb   :  { %v497_v6 = vpack.c.bf16 %v483_v4, %v482_v3 }
  0xfc   :  { %v418_v12 = vpop.f32.mrf.mxu3 }
  0xfd   :  { %585 = vmatmul.bf16.gmra.mxu0 %v497_v6  ;;  %702 = vmatmul.bf16.gmra.mxu3 %v497_v6  ;;  %v419_v13 = vadd.f32 %v2240_v19, %v418_v12 }
  0xff   :  { %v468_v16 = vadd.f32 %v467_v14, %v419_v13  ;;  %v470_v21 = vpop.f32.mrf.mxu1 }
 0x101   :  { %v491_v17 = vmax.f32 %v468_v16, 0.0  ;;  %v739_v16 = vld [vmem:[#allocation5 + $0x8] sm:$0xff] }
 0x103   :  { %v501_v20 = vpack.c.bf16 %v491_v17, %v490_v15 }
 0x104   :  { %v421_v18 = vpop.f32.mrf.mxu3 }
 0x105   :  { %605 = vmatmul.bf16.gmra.mxu2 %v501_v20  ;;  %v422_v22 = vadd.f32 %v2240_v19, %v421_v18 }
 0x107   :  { %v471_v23 = vadd.f32 %v470_v21, %v422_v22  ;;  %v472_v26 = vpop.f32.mrf.mxu1 }
 0x109   :  { %v492_v27 = vmax.f32 %v471_v23, 0.0 }
 0x10c   :  { %v423_v24 = vpop.f32.mrf.mxu3 }
 0x10d   :  { %707 = vmatmul.bf16.gmra.mxu3 %v498_v32  ;;  %v424_v25 = vadd.f32 %v2240_v19, %v423_v24 }
 0x10f   :  { %v473_v28 = vadd.f32 %v472_v26, %v424_v25  ;;  %v475_v33 = vpop.f32.mrf.mxu1 }
 0x111   :  { %v493_v29 = vmax.f32 %v473_v28, 0.0 }
 0x113   :  { %v502_v31 = vpack.c.bf16 %v493_v29, %v492_v27 }
 0x114   :  { %v426_v30 = vpop.f32.mrf.mxu3 }
 0x115   :  { %610 = vmatmul.bf16.gmra.mxu2 %v502_v31  ;;  %v427_v34 = vadd.f32 %v2240_v19, %v426_v30 }
 0x117   :  { %v476_v32 = vadd.f32 %v475_v33, %v427_v34  ;;  %v477_v37 = vpop.f32.mrf.mxu1 }
 0x119   :  { %v494_v38 = vmax.f32 %v476_v32, 0.0 }
 0x11c   :  { %v428_v35 = vpop.f32.mrf.mxu3 }
 0x11d   :  { %712 = vmatmul.bf16.gmra.mxu3 %v499_v52  ;;  %v429_v36 = vadd.f32 %v2240_v19, %v428_v35  ;;  %v1737_v19 = vld [vmem:[#allocation11 + $0x10] sm:$0xff] }
 0x11e   :  { %915 = vmatpush.bf16.msrb.mxu0 %v1737_v19 }
 0x11f   :  { %v478_v39 = vadd.f32 %v477_v37, %v429_v36  ;;  %v740_v36 = vld [vmem:[#allocation5 + $0x10] sm:$0xff] }
 0x121   :  { %v495_v40 = vmax.f32 %v478_v39, 0.0 }
 0x122   :  { %916 = vmatpush.bf16.msrb.mxu0 %v1736_v48 }
 0x123   :  { %v503_v41 = vpack.c.bf16 %v495_v40, %v494_v38  ;;  %v741_v40 = vld [vmem:[#allocation5 + $0x18] sm:$0xff] }
 0x125   :  { %615 = vmatmul.bf16.gmra.mxu2 %v503_v41 }
 0x126   :  { %917 = vmatpush.bf16.msrb.mxu0 %v1735_v51 }
 0x12d   :  { %717 = vmatmul.bf16.gmra.mxu3 %v500_v8 }
 0x13d   :  { %722 = vmatmul.bf16.gmra.mxu3 %v501_v20 }
 0x14d   :  { %727 = vmatmul.bf16.gmra.mxu3 %v502_v31 }
 0x158   :  { %v591_v47 = vpop.f32.mrf.mxu2 }
 0x159   :  { %v2264_v50 = vadd.f32 %v2261_v49, %v591_v47 }
 0x15b   :  { %1347 = vst [vmem:[#allocation15 + $0x20] sm:$0xff] %v2264_v50 }
 0x15d   :  { %732 = vmatmul.bf16.gmra.mxu3 %v503_v41 }
 0x160   :  { %v593_v52 = vpop.f32.mrf.mxu2 }
 0x161   :  { %v2268_v53 = vadd.f32 %v2261_v49, %v593_v52 }
 0x163   :  { %1348 = vst [vmem:[#allocation15 + $0x28] sm:$0xff] %v2268_v53 }
 0x168   :  { %v596_v59 = vpop.f32.mrf.mxu2 }
 0x169   :  { %v2279_v61 = vadd.f32 %v2261_v49, %v596_v59  ;;  %v1681_v59 = vld [vmem:[#allocation13 + $0x70] sm:$0xf] }
 0x16a   :  { %v581_v54 = vpop.f32.mrf.mxu0 }
 0x16b   :  { %v582_v55 = vadd.f32 %v2261_v49, %v581_v54  ;;  %1349 = vst [vmem:[#allocation15 + $0x30] sm:$0xff] %v2279_v61 }
 0x16d   :  { %1343 = vst [vmem:[#allocation15] sm:$0xff] %v582_v55 }
 0x170   :  { %v698_v57 = vpop.f32.mrf.mxu3  ;;  %v598_v3 = vpop.f32.mrf.mxu2 }
 0x171   :  { %v699_v58 = vadd.f32 %v2275_v56, %v698_v57  ;;  %v2285_v5 = vadd.f32 %v2261_v49, %v598_v3  ;;  %v1757_v57 = vld [vmem:[#allocation13 + $0x74] sm:$0xf] }
 0x172   :  { %v583_v60 = vpop.f32.mrf.mxu0 }
 0x173   :  { %v754_v62 = vmul.f32 0.5, %v699_v58  ;;  %v584_v63 = vadd.f32 %v2261_v49, %v583_v60  ;;  %1350 = vst [vmem:[#allocation15 + $0x38] sm:$0xff] %v2285_v5  ;;  %v1683_v58 = vld [vmem:[#allocation13 + $0x78] sm:$0xf0] }
 0x175   :  { %1344 = vst [vmem:[#allocation15 + $0x8] sm:$0xff] %v584_v63  ;;  %v770_v0 = vmul.f32 1.442695, %v754_v62  ;;  %v1686_v62 = vor.u32 %v1757_v57, %v1683_v58 }
 0x177   :  { %1800 = vpow2.f32 %v770_v0  ;;  %1134 = vmatpush.bf16.msrb.mxu2 %v1686_v62 }
 0x178   :  { %v700_v1 = vpop.f32.mrf.mxu3  ;;  %v601_v13 = vpop.f32.mrf.mxu2 }
 0x179   :  { %v701_v2 = vadd.f32 %v2275_v56, %v700_v1  ;;  %v2291_v15 = vadd.f32 %v2261_v49, %v601_v13  ;;  %v1755_v13 = vld [vmem:[#allocation13 + $0x64] sm:$0xf] }
 0x17a   :  { %v586_v4 = vpop.f32.mrf.mxu0 }
 0x17b   :  { %v755_v6 = vmul.f32 0.5, %v701_v2  ;;  %v587_v7 = vadd.f32 %v2261_v49, %v586_v4  ;;  %1351 = vst [vmem:[#allocation15 + $0x40] sm:$0xff] %v2291_v15  ;;  %v742_v2 = vld [vmem:[#allocation5 + $0x20] sm:$0xff] }
 0x17d   :  { %v772_v8 = vmul.f32 1.442695, %v755_v6  ;;  %1345 = vst [vmem:[#allocation15 + $0x10] sm:$0xff] %v587_v7  ;;  %v1801_v10 = vpop.eup %1800 }
 0x17e   :  { %v802_v20 = vmul.f32 %v1801_v10, %v738_v11 }
 0x17f   :  { %1802 = vpow2.f32 %v772_v8  ;;  %v743_v8 = vld [vmem:[#allocation5 + $0x28] sm:$0xff] }
 0x180   :  { %v703_v9 = vpop.f32.mrf.mxu3  ;;  %v818_v25 = vadd.f32 %v802_v20, %v582_v55  ;;  %v603_v28 = vpop.f32.mrf.mxu2 }
 0x181   :  { %v704_v12 = vadd.f32 %v2275_v56, %v703_v9  ;;  %v2297_v30 = vadd.f32 %v2261_v49, %v603_v28 }
 0x182   :  { %v588_v14 = vpop.f32.mrf.mxu0 }
 0x183   :  { %v756_v17 = vmul.f32 0.5, %v704_v12  ;;  %v589_v18 = vadd.f32 %v2261_v49, %v588_v14  ;;  %1352 = vst [vmem:[#allocation15 + $0x48] sm:$0xff] %v2297_v30  ;;  %v1675_v14 = vld [vmem:[#allocation13 + $0x68] sm:$0xf0] }
 0x184   :  { %v1678_v20 = vor.u32 %v1755_v13, %v1675_v14 }
 0x185   :  { %v1803_v21 = vpop.eup %1802  ;;  %1346 = vst [vmem:[#allocation15 + $0x18] sm:$0xff] %v589_v18  ;;  %v774_v23 = vmul.f32 1.442695, %v756_v17 }
 0x186   :  { %v803_v22 = vmul.f32 %v1803_v21, %v739_v16  ;;  %1135 = vmatpush.bf16.msrb.mxu2 %v1678_v20 }
 0x187   :  { %1804 = vpow2.f32 %v774_v23 }
 0x188   :  { %v705_v24 = vpop.f32.mrf.mxu3  ;;  %v819_v26 = vadd.f32 %v803_v22, %v584_v63  ;;  %v606_v37 = vpop.f32.mrf.mxu2  ;;  %v1758_v63 = vld [vmem:[#allocation13 + $0x74] sm:$0xf0] }
 0x189   :  { %v706_v27 = vadd.f32 %v2275_v56, %v705_v24  ;;  %v2302_v38 = vadd.f32 %v2261_v49, %v606_v37  ;;  %v1682_v3 = vor.u32 %v1758_v63, %v1681_v59 }
 0x18a   :  { %v834_v29 = vpack.c.bf16 %v819_v26, %v818_v25 }
 0x18b   :  { %v757_v31 = vmul.f32 0.5, %v706_v27  ;;  %1353 = vst [vmem:[#allocation15 + $0x50] sm:$0xff] %v2302_v38  ;;  %1085 = vmatpush.bf16.msrb.mxu1 %v1682_v3  ;;  %v1673_v27 = vld [vmem:[#allocation13 + $0x60] sm:$0xf] }
 0x18c   :  { %918 = vmatmul.bf16.vlgmr.msrb.gmra.mxu0 %v834_v29 }
 0x18d   :  { %v776_v33 = vmul.f32 1.442695, %v757_v31  ;;  %v1805_v32 = vpop.eup %1804 }
 0x18e   :  { %v804_v41 = vmul.f32 %v1805_v32, %v740_v36  ;;  %v745_v36 = vld [vmem:[#allocation5 + $0x38] sm:$0xff] }
 0x18f   :  { %1806 = vpow2.f32 %v776_v33  ;;  %v744_v33 = vld [vmem:[#allocation5 + $0x30] sm:$0xff] }
 0x190   :  { %v708_v34 = vpop.f32.mrf.mxu3  ;;  %v820_v46 = vadd.f32 %v804_v41, %v587_v7  ;;  %v608_v48 = vpop.f32.mrf.mxu2 }
 0x191   :  { %v709_v35 = vadd.f32 %v2275_v56, %v708_v34  ;;  %v2307_v52 = vadd.f32 %v2261_v49, %v608_v48  ;;  %v1754_v48 = vld [vmem:[#allocation13 + $0x54] sm:$0xf0] }
 0x193   :  { %v758_v39 = vmul.f32 0.5, %v709_v35  ;;  %1354 = vst [vmem:[#allocation15 + $0x58] sm:$0xff] %v2307_v52 }
 0x195   :  { %v1807_v42 = vpop.eup %1806  ;;  %v778_v44 = vmul.f32 1.442695, %v758_v39 }
 0x196   :  { %v805_v43 = vmul.f32 %v1807_v42, %v741_v40  ;;  %v1753_v42 = vld [vmem:[#allocation13 + $0x54] sm:$0xf] }
 0x197   :  { %1808 = vpow2.f32 %v778_v44  ;;  %v1665_v44 = vld [vmem:[#allocation13 + $0x50] sm:$0xf] }
 0x198   :  { %v710_v45 = vpop.f32.mrf.mxu3  ;;  %v821_v19 = vadd.f32 %v805_v43, %v589_v18  ;;  %v611_v4 = vpop.f32.mrf.mxu2  ;;  %v1667_v43 = vld [vmem:[#allocation13 + $0x58] sm:$0xf0] }
 0x199   :  { %v711_v47 = vadd.f32 %v2275_v56, %v710_v45  ;;  %v2312_v6 = vadd.f32 %v2261_v49, %v611_v4 }
 0x19a   :  { %v835_v51 = vpack.c.bf16 %v821_v19, %v820_v46 }
 0x19b   :  { %v759_v54 = vmul.f32 0.5, %v711_v47  ;;  %1355 = vst [vmem:[#allocation15 + $0x60] sm:$0xff] %v2312_v6  ;;  %v1670_v47 = vor.u32 %v1753_v42, %v1667_v43 }
 0x19c   :  { %923 = vmatmul.bf16.gmra.mxu0 %v835_v51 }
 0x19d   :  { %v780_v55 = vmul.f32 1.442695, %v759_v54  ;;  %v1809_v0 = vpop.eup %1808  ;;  %v1666_v54 = vor.u32 %v1754_v48, %v1665_v44  ;;  %1136 = vmatpush.bf16.msrb.mxu2 %v1670_v47 }
 0x19e   :  { %v806_v9 = vmul.f32 %v1809_v0, %v742_v2  ;;  %v746_v2 = vld [vmem:[#allocation5 + $0x40] sm:$0xff] }
 0x19f   :  { %1810 = vpow2.f32 %v780_v55 }
 0x1a0   :  { %v713_v60 = vpop.f32.mrf.mxu3  ;;  %v822_v17 = vadd.f32 %v806_v9, %v2264_v50  ;;  %v613_v22 = vpop.f32.mrf.mxu2  ;;  %v1756_v50 = vld [vmem:[#allocation13 + $0x64] sm:$0xf0] }
 0x1a1   :  { %v714_v1 = vadd.f32 %v2275_v56, %v713_v60  ;;  %v2319_v24 = vadd.f32 %v2261_v49, %v613_v22  ;;  %v1659_v60 = vld [vmem:[#allocation13 + $0x48] sm:$0xf0]  ;;  %v1749_v22 = vld [vmem:[#allocation13 + $0x34] sm:$0xf] }
 0x1a3   :  { %v760_v7 = vmul.f32 0.5, %v714_v1  ;;  %1356 = vst [vmem:[#allocation15 + $0x68] sm:$0xff] %v2319_v24 }
 0x1a5   :  { %v1811_v10 = vpop.eup %1810  ;;  %v782_v12 = vmul.f32 1.442695, %v760_v7 }
 0x1a6   :  { %v807_v11 = vmul.f32 %v1811_v10, %v743_v8  ;;  %v1657_v10 = vld [vmem:[#allocation13 + $0x40] sm:$0xf] }
 0x1a7   :  { %1812 = vpow2.f32 %v782_v12 }
 0x1a8   :  { %v715_v16 = vpop.f32.mrf.mxu3  ;;  %v823_v18 = vadd.f32 %v807_v11, %v2268_v53  ;;  %v1674_v53 = vor.u32 %v1756_v50, %v1673_v27  ;;  %v616_v34 = vpop.f32.mrf.mxu2  ;;  %v1752_v11 = vld [vmem:[#allocation13 + $0x44] sm:$0xf0]  ;;  %v1750_v50 = vld [vmem:[#allocation13 + $0x34] sm:$0xf0] }
 0x1a9   :  { %v716_v21 = vadd.f32 %v2275_v56, %v715_v16  ;;  %v2324_v32 = vadd.f32 %v2261_v49, %v616_v34  ;;  %v1658_v16 = vor.u32 %v1752_v11, %v1657_v10  ;;  %v1748_v34 = vld [vmem:[#allocation13 + $0x24] sm:$0xf0] }
 0x1aa   :  { %v836_v23 = vpack.c.bf16 %v823_v18, %v822_v17  ;;  %1086 = vmatpush.bf16.msrb.mxu1 %v1674_v53 }
 0x1ab   :  { %v761_v25 = vmul.f32 0.5, %v716_v21  ;;  %1357 = vst [vmem:[#allocation15 + $0x70] sm:$0xff] %v2324_v32 }
 0x1ac   :  { %928 = vmatmul.bf16.gmra.mxu0 %v836_v23  ;;  %v1651_v23 = vld [vmem:[#allocation13 + $0x38] sm:$0xf0] }
 0x1ad   :  { %v784_v26 = vmul.f32 1.442695, %v761_v25  ;;  %v1813_v29 = vpop.eup %1812  ;;  %v1649_v25 = vld [vmem:[#allocation13 + $0x30] sm:$0xf]  ;;  %v1654_v27 = vor.u32 %v1749_v22, %v1651_v23  ;;  %v753_v22 = vld [vmem:[#allocation5 + $0x78] sm:$0xff] }
 0x1ae   :  { %v808_v37 = vmul.f32 %v1813_v29, %v744_v33  ;;  %1087 = vmatpush.bf16.msrb.mxu1 %v1666_v54  ;;  %v748_v29 = vld [vmem:[#allocation5 + $0x50] sm:$0xff]  ;;  %v1641_v33 = vld [vmem:[#allocation13 + $0x20] sm:$0xf]  ;;  %v1635_v54 = vld [vmem:[#allocation13 + $0x18] sm:$0xf0] }
 0x1af   :  { %1814 = vpow2.f32 %v784_v26 }
 0x1b0   :  { %v718_v28 = vpop.f32.mrf.mxu3  ;;  %v824_v46 = vadd.f32 %v808_v37, %v2279_v61  ;;  %v618_v55 = vpop.f32.mrf.mxu2  ;;  %v749_v37 = vld [vmem:[#allocation5 + $0x58] sm:$0xff] }
 0x1b1   :  { %v719_v31 = vadd.f32 %v2275_v56, %v718_v28  ;;  %v2331_v58 = vadd.f32 %v2261_v49, %v618_v55  ;;  %v747_v49 = vld [vmem:[#allocation5 + $0x48] sm:$0xff]  ;;  %v1747_v28 = vld [vmem:[#allocation13 + $0x24] sm:$0xf]  ;;  %v1633_v55 = vld [vmem:[#allocation13 + $0x10] sm:$0xf] }
 0x1b2   :  { %1088 = vmatpush.bf16.msrb.mxu1 %v1658_v16 }
 0x1b3   :  { %v762_v35 = vmul.f32 0.5, %v719_v31  ;;  %1358 = vst [vmem:[#allocation15 + $0x78] sm:$0xff] %v2331_v58  ;;  %v1650_v31 = vor.u32 %v1750_v50, %v1649_v25 }
 0x1b5   :  { %v1815_v39 = vpop.eup %1814  ;;  %v786_v40 = vmul.f32 1.442695, %v762_v35 }
 0x1b6   :  { %v809_v41 = vmul.f32 %v1815_v39, %v745_v36  ;;  %1089 = vmatpush.bf16.msrb.mxu1 %v1650_v31  ;;  %v1642_v39 = vor.u32 %v1748_v34, %v1641_v33 }
 0x1b7   :  { %1816 = vpow2.f32 %v786_v40 }
 0x1b8   :  { %v720_v45 = vpop.f32.mrf.mxu3  ;;  %v825_v19 = vadd.f32 %v809_v41, %v2285_v5  ;;  %v1751_v5 = vld [vmem:[#allocation13 + $0x44] sm:$0xf] }
 0x1b9   :  { %v721_v51 = vadd.f32 %v2275_v56, %v720_v45  ;;  %v1662_v63 = vor.u32 %v1751_v5, %v1659_v60 }
 0x1ba   :  { %v837_v57 = vpack.c.bf16 %v825_v19, %v824_v46  ;;  %1090 = vmatpush.bf16.msrb.mxu1 %v1642_v39 }
 0x1bb   :  { %v763_v59 = vmul.f32 0.5, %v721_v51  ;;  %1137 = vmatpush.bf16.msrb.mxu2 %v1662_v63  ;;  %v1745_v51 = vld [vmem:[#allocation13 + $0x14] sm:$0xf] }
 0x1bc   :  { %933 = vmatmul.bf16.gmra.mxu0 %v837_v57 }
 0x1bd   :  { %v788_v61 = vmul.f32 1.442695, %v763_v59  ;;  %v1817_v0 = vpop.eup %1816  ;;  %v1638_v59 = vor.u32 %v1745_v51, %v1635_v54 }
 0x1be   :  { %v810_v4 = vmul.f32 %v1817_v0, %v746_v2  ;;  %v751_v0 = vld [vmem:[#allocation5 + $0x68] sm:$0xff] }
 0x1bf   :  { %1818 = vpow2.f32 %v788_v61  ;;  %1138 = vmatpush.bf16.msrb.mxu2 %v1654_v27  ;;  %v1746_v61 = vld [vmem:[#allocation13 + $0x14] sm:$0xf0] }
 0x1c0   :  { %v723_v62 = vpop.f32.mrf.mxu3  ;;  %v826_v13 = vadd.f32 %v810_v4, %v2291_v15  ;;  %v1643_v15 = vld [vmem:[#allocation13 + $0x28] sm:$0xf0]  ;;  %v1634_v5 = vor.u32 %v1746_v61, %v1633_v55 }
 0x1c1   :  { %v724_v1 = vadd.f32 %v2275_v56, %v723_v62  ;;  %v1646_v35 = vor.u32 %v1747_v28, %v1643_v15  ;;  %v750_v62 = vld [vmem:[#allocation5 + $0x60] sm:$0xff] }
 0x1c2   :  { %1091 = vmatpush.bf16.msrb.mxu1 %v1634_v5  ;;  %v2351_v28 = vld [vmem:[%s2429_s9] ss:$0 sm:$0xff] }
 0x1c3   :  { %v764_v3 = vmul.f32 0.5, %v724_v1  ;;  %1139 = vmatpush.bf16.msrb.mxu2 %v1646_v35 }
 0x1c5   :  { %v1819_v7 = vpop.eup %1818  ;;  %v790_v9 = vmul.f32 1.442695, %v764_v3 }
 0x1c6   :  { %v811_v8 = vmul.f32 %v1819_v7, %v747_v49 }
 0x1c7   :  { %1820 = vpow2.f32 %v790_v9  ;;  %1140 = vmatpush.bf16.msrb.mxu2 %v1638_v59 }
 0x1c8   :  { %v725_v12 = vpop.f32.mrf.mxu3  ;;  %v827_v14 = vadd.f32 %v811_v8, %v2297_v30 }
 0x1c9   :  { %v726_v17 = vadd.f32 %v2275_v56, %v725_v12  ;;  %v1743_v12 = vld [vmem:[#allocation13 + $0x4] sm:$0xf] }
 0x1ca   :  { %v838_v18 = vpack.c.bf16 %v827_v14, %v826_v13  ;;  %v1627_v13 = vld [vmem:[#allocation13 + $0x8] sm:$0xf0] }
 0x1cb   :  { %v765_v20 = vmul.f32 0.5, %v726_v17  ;;  %v1630_v16 = vor.u32 %v1743_v12, %v1627_v13 }
 0x1cc   :  { %938 = vmatmul.bf16.gmra.mxu0 %v838_v18  ;;  %v752_v18 = vld [vmem:[#allocation5 + $0x70] sm:$0xff] }
 0x1cd   :  { %v792_v21 = vmul.f32 1.442695, %v765_v20  ;;  %v1821_v53 = vpop.eup %1820  ;;  %1141 = vmatpush.bf16.msrb.mxu2 %v1630_v16  ;;  %v1625_v20 = vld [vmem:[#allocation13] sm:$0xf] }
 0x1ce   :  { %v812_v40 = vmul.f32 %v1821_v53, %v748_v29 }
 0x1cf   :  { %1822 = vpow2.f32 %v792_v21  ;;  %v1744_v21 = vld [vmem:[#allocation13 + $0x4] sm:$0xf0] }
 0x1d0   :  { %v728_v26 = vpop.f32.mrf.mxu3  ;;  %v828_v45 = vadd.f32 %v812_v40, %v2302_v38 }
 0x1d1   :  { %v729_v30 = vadd.f32 %v2275_v56, %v728_v26 }
 0x1d3   :  { %v766_v36 = vmul.f32 0.5, %v729_v30 }
 0x1d5   :  { %v1823_v41 = vpop.eup %1822  ;;  %v794_v43 = vmul.f32 1.442695, %v766_v36 }
 0x1d6   :  { %v813_v42 = vmul.f32 %v1823_v41, %v749_v37 }
 0x1d7   :  { %1824 = vpow2.f32 %v794_v43 }
 0x1d8   :  { %v730_v44 = vpop.f32.mrf.mxu3  ;;  %v829_v46 = vadd.f32 %v813_v42, %v2307_v52 }
 0x1d9   :  { %v731_v19 = vadd.f32 %v2275_v56, %v730_v44 }
 0x1da   :  { %v839_v47 = vpack.c.bf16 %v829_v46, %v828_v45 }
 0x1db   :  { %v767_v48 = vmul.f32 0.5, %v731_v19 }
 0x1dc   :  { %943 = vmatmul.bf16.gmra.mxu0 %v839_v47 }
 0x1dd   :  { %v796_v57 = vmul.f32 1.442695, %v767_v48  ;;  %v1825_v38 = vpop.eup %1824 }
 0x1de   :  { %v814_v1 = vmul.f32 %v1825_v38, %v750_v62 }
 0x1df   :  { %1826 = vpow2.f32 %v796_v57 }
 0x1e0   :  { %v733_v60 = vpop.f32.mrf.mxu3  ;;  %v830_v7 = vadd.f32 %v814_v1, %v2312_v6  ;;  %v1626_v6 = vor.u32 %v1744_v21, %v1625_v20 }
 0x1e1   :  { %v734_v52 = vadd.f32 %v2275_v56, %v733_v60 }
 0x1e2   :  { %1092 = vmatpush.bf16.msrb.mxu1 %v1626_v6  ;;  %v999_v6 = vld [vmem:[%s2431_s11] sm:$0x3] }
 0x1e3   :  { %v768_v63 = vmul.f32 0.5, %v734_v52 }
 0x1e5   :  { %v1827_v2 = vpop.eup %1826  ;;  %v798_v49 = vmul.f32 1.442695, %v768_v63 }
 0x1e6   :  { %v815_v3 = vmul.f32 %v1827_v2, %v751_v0 }
 0x1e7   :  { %1828 = vpow2.f32 %v798_v49 }
 0x1e8   :  { %v735_v4 = vpop.f32.mrf.mxu3  ;;  %v831_v8 = vadd.f32 %v815_v3, %v2319_v24 }
 0x1e9   :  { %v736_v9 = vadd.f32 %v2275_v56, %v735_v4 }
 0x1ea   :  { %v840_v10 = vpack.c.bf16 %v831_v8, %v830_v7 }
 0x1eb   :  { %v769_v11 = vmul.f32 0.5, %v736_v9 }
 0x1ec   :  { %948 = vmatmul.bf16.gmra.mxu0 %v840_v10 }
 0x1ed   :  { %v800_v14 = vmul.f32 1.442695, %v769_v11  ;;  %v1829_v17 = vpop.eup %1828 }
 0x1ee   :  { %v816_v23 = vmul.f32 %v1829_v17, %v752_v18 }
 0x1ef   :  { %1830 = vpow2.f32 %v800_v14 }
 0x1f0   :  { %v832_v25 = vadd.f32 %v816_v23, %v2324_v32  ;;  %v2372_v23 = vperm.slane %v999_v6, 0 }
 0x1f5   :  { %v1831_v24 = vpop.eup %1830 }
 0x1f6   :  { %v817_v56 = vmul.f32 %v1831_v24, %v753_v22 }
 0x1f8   :  { %v833_v26 = vadd.f32 %v817_v56, %v2331_v58 }
 0x1fa   :  { %v841_v27 = vpack.c.bf16 %v833_v26, %v832_v25  ;;  %v2375_v26 = vperm.slane %v999_v6, 1 }
 0x1fc   :  { %953 = vmatmul.bf16.gmra.mxu0 %v841_v27 }
 0x209   :  { %v919_v50 = vpop.f32.mrf.mxu0 }
 0x20a   :  { %v920_v15 = vadd.f32 %v2351_v28, %v919_v50 }
 0x20c   :  { %v959_v29 = vmax.f32 %v920_v15, 0.0 }
 0x211   :  { %v921_v53 = vpop.f32.mrf.mxu0 }
 0x212   :  { %v922_v30 = vadd.f32 %v2351_v28, %v921_v53 }
 0x214   :  { %v960_v31 = vmax.f32 %v922_v30, 0.0 }
 0x216   :  { %v975_v33 = vpack.c.bf16 %v960_v31, %v959_v29 }
 0x218   :  { %1093 = vmatmul.bf16.vlgmr.msrb.gmra.mxu1 %v975_v33  ;;  %1142 = vmatmul.bf16.vlgmr.msrb.gmra.mxu2 %v975_v33 }
 0x219   :  { %v924_v32 = vpop.f32.mrf.mxu0 }
 0x21a   :  { %v925_v58 = vadd.f32 %v2351_v28, %v924_v32 }
 0x21c   :  { %v961_v36 = vmax.f32 %v925_v58, 0.0 }
 0x221   :  { %v926_v34 = vpop.f32.mrf.mxu0 }
 0x222   :  { %v927_v35 = vadd.f32 %v2351_v28, %v926_v34 }
 0x224   :  { %v962_v37 = vmax.f32 %v927_v35, 0.0 }
 0x226   :  { %v976_v39 = vpack.c.bf16 %v962_v37, %v961_v36 }
 0x228   :  { %1098 = vmatmul.bf16.gmra.mxu1 %v976_v39  ;;  %1147 = vmatmul.bf16.gmra.mxu2 %v976_v39 }
 0x229   :  { %v929_v40 = vpop.f32.mrf.mxu0 }
 0x22a   :  { %v930_v41 = vadd.f32 %v2351_v28, %v929_v40 }
 0x22c   :  { %v963_v44 = vmax.f32 %v930_v41, 0.0 }
 0x231   :  { %v931_v42 = vpop.f32.mrf.mxu0 }
 0x232   :  { %v932_v43 = vadd.f32 %v2351_v28, %v931_v42 }
 0x234   :  { %v964_v45 = vmax.f32 %v932_v43, 0.0 }
 0x236   :  { %v977_v46 = vpack.c.bf16 %v964_v45, %v963_v44 }
 0x238   :  { %1103 = vmatmul.bf16.gmra.mxu1 %v977_v46  ;;  %1152 = vmatmul.bf16.gmra.mxu2 %v977_v46 }
 0x239   :  { %v934_v19 = vpop.f32.mrf.mxu0 }
 0x23a   :  { %v935_v47 = vadd.f32 %v2351_v28, %v934_v19 }
 0x23c   :  { %v965_v54 = vmax.f32 %v935_v47, 0.0 }
 0x241   :  { %v936_v48 = vpop.f32.mrf.mxu0 }
 0x242   :  { %v937_v51 = vadd.f32 %v2351_v28, %v936_v48 }
 0x244   :  { %v966_v55 = vmax.f32 %v937_v51, 0.0 }
 0x246   :  { %v978_v57 = vpack.c.bf16 %v966_v55, %v965_v54 }
 0x248   :  { %1108 = vmatmul.bf16.gmra.mxu1 %v978_v57  ;;  %1157 = vmatmul.bf16.gmra.mxu2 %v978_v57 }
 0x249   :  { %v939_v59 = vpop.f32.mrf.mxu0 }
 0x24a   :  { %v940_v61 = vadd.f32 %v2351_v28, %v939_v59 }
 0x24c   :  { %v967_v38 = vmax.f32 %v940_v61, 0.0 }
 0x251   :  { %v941_v5 = vpop.f32.mrf.mxu0 }
 0x252   :  { %v942_v60 = vadd.f32 %v2351_v28, %v941_v5 }
 0x254   :  { %v968_v52 = vmax.f32 %v942_v60, 0.0 }
 0x256   :  { %v979_v62 = vpack.c.bf16 %v968_v52, %v967_v38 }
 0x258   :  { %1113 = vmatmul.bf16.gmra.mxu1 %v979_v62  ;;  %1162 = vmatmul.bf16.gmra.mxu2 %v979_v62 }
 0x259   :  { %v944_v63 = vpop.f32.mrf.mxu0 }
 0x25a   :  { %v945_v0 = vadd.f32 %v2351_v28, %v944_v63 }
 0x25c   :  { %v969_v3 = vmax.f32 %v945_v0, 0.0 }
 0x261   :  { %v946_v1 = vpop.f32.mrf.mxu0 }
 0x262   :  { %v947_v2 = vadd.f32 %v2351_v28, %v946_v1 }
 0x264   :  { %v970_v49 = vmax.f32 %v947_v2, 0.0 }
 0x266   :  { %v980_v4 = vpack.c.bf16 %v970_v49, %v969_v3 }
 0x268   :  { %1118 = vmatmul.bf16.gmra.mxu1 %v980_v4  ;;  %1167 = vmatmul.bf16.gmra.mxu2 %v980_v4 }
 0x269   :  { %v949_v7 = vpop.f32.mrf.mxu0 }
 0x26a   :  { %v950_v8 = vadd.f32 %v2351_v28, %v949_v7 }
 0x26c   :  { %v971_v11 = vmax.f32 %v950_v8, 0.0 }
 0x271   :  { %v951_v9 = vpop.f32.mrf.mxu0 }
 0x272   :  { %v952_v10 = vadd.f32 %v2351_v28, %v951_v9 }
 0x274   :  { %v972_v12 = vmax.f32 %v952_v10, 0.0 }
 0x276   :  { %v981_v13 = vpack.c.bf16 %v972_v12, %v971_v11 }
 0x278   :  { %1123 = vmatmul.bf16.gmra.mxu1 %v981_v13  ;;  %1172 = vmatmul.bf16.gmra.mxu2 %v981_v13 }
 0x279   :  { %v954_v14 = vpop.f32.mrf.mxu0 }
 0x27a   :  { %v955_v16 = vadd.f32 %v2351_v28, %v954_v14 }
 0x27c   :  { %v973_v20 = vmax.f32 %v955_v16, 0.0 }
 0x281   :  { %v956_v17 = vpop.f32.mrf.mxu0 }
 0x282   :  { %v957_v18 = vadd.f32 %v2351_v28, %v956_v17 }
 0x284   :  { %v974_v21 = vmax.f32 %v957_v18, 0.0 }
 0x286   :  { %v982_v22 = vpack.c.bf16 %v974_v21, %v973_v20 }
 0x288   :  { %1128 = vmatmul.bf16.gmra.mxu1 %v982_v22  ;;  %1177 = vmatmul.bf16.gmra.mxu2 %v982_v22 }
 0x295   :  { %v1094_v24 = vpop.f32.mrf.mxu1 }
 0x296   :  { %v1095_v56 = vadd.f32 %v1094_v24, %v2372_v23 }
 0x298   :  { %v1183_v25 = vmul.f32 0.5, %v1095_v56 }
 0x29a   :  { %1832 = vtanh.f32 %v1183_v25 }
 0x29b   :  { %v1143_v27 = vpop.f32.mrf.mxu2 }
 0x29c   :  { %v1144_v50 = vadd.f32 %v1143_v27, %v2375_v26 }
 0x29d   :  { %v1096_v28 = vpop.f32.mrf.mxu1 }
 0x29e   :  { %v1184_v15 = vmul.f32 0.5, %v1144_v50  ;;  %v1097_v53 = vadd.f32 %v1096_v28, %v2372_v23 }
 0x2a0   :  { %1834 = vtanh.f32 %v1184_v15  ;;  %v1185_v30 = vmul.f32 0.5, %v1097_v53  ;;  %v1833_v29 = vpop.eup %1832 }
 0x2a1   :  { %v1247_v32 = vmul.f32 0.5, %v1833_v29 }
 0x2a2   :  { %1836 = vtanh.f32 %v1185_v30 }
 0x2a3   :  { %v1145_v31 = vpop.f32.mrf.mxu2  ;;  %v1279_v40 = vadd.f32 0.5, %v1247_v32 }
 0x2a4   :  { %v1146_v33 = vadd.f32 %v1145_v31, %v2375_v26 }
 0x2a5   :  { %v1099_v58 = vpop.f32.mrf.mxu1 }
 0x2a6   :  { %v1835_v34 = vpop.eup %1834  ;;  %v1186_v35 = vmul.f32 0.5, %v1146_v33  ;;  %v1100_v36 = vadd.f32 %v1099_v58, %v2372_v23 }
 0x2a7   :  { %v1248_v37 = vmul.f32 0.5, %v1835_v34 }
 0x2a8   :  { %1838 = vtanh.f32 %v1186_v35  ;;  %v1187_v39 = vmul.f32 0.5, %v1100_v36  ;;  %v1837_v42 = vpop.eup %1836 }
 0x2a9   :  { %v1280_v41 = vadd.f32 0.5, %v1248_v37  ;;  %v1249_v46 = vmul.f32 0.5, %v1837_v42 }
 0x2aa   :  { %1840 = vtanh.f32 %v1187_v39 }
 0x2ab   :  { %v1311_v43 = vpack.c.bf16 %v1280_v41, %v1279_v40  ;;  %v1148_v44 = vpop.f32.mrf.mxu2  ;;  %v1281_v57 = vadd.f32 0.5, %v1249_v46 }
 0x2ac   :  { %v1149_v45 = vadd.f32 %v1148_v44, %v2375_v26 }
 0x2ad   :  { %1327 = vst [vmem:[#allocation14] sm:$0xff] %v1311_v43  ;;  %v1101_v19 = vpop.f32.mrf.mxu1 }
 0x2ae   :  { %v1839_v47 = vpop.eup %1838  ;;  %v1188_v48 = vmul.f32 0.5, %v1149_v45  ;;  %v1102_v51 = vadd.f32 %v1101_v19, %v2372_v23 }
 0x2af   :  { %v1250_v54 = vmul.f32 0.5, %v1839_v47 }
 0x2b0   :  { %1842 = vtanh.f32 %v1188_v48  ;;  %v1189_v55 = vmul.f32 0.5, %v1102_v51  ;;  %v1841_v61 = vpop.eup %1840 }
 0x2b1   :  { %v1282_v59 = vadd.f32 0.5, %v1250_v54  ;;  %v1251_v52 = vmul.f32 0.5, %v1841_v61 }
 0x2b2   :  { %1844 = vtanh.f32 %v1189_v55 }
 0x2b3   :  { %v1312_v5 = vpack.c.bf16 %v1282_v59, %v1281_v57  ;;  %v1150_v60 = vpop.f32.mrf.mxu2  ;;  %v1283_v49 = vadd.f32 0.5, %v1251_v52 }
 0x2b4   :  { %v1151_v38 = vadd.f32 %v1150_v60, %v2375_v26 }
 0x2b5   :  { %1328 = vst [vmem:[#allocation14 + $0x8] sm:$0xff] %v1312_v5  ;;  %v1104_v62 = vpop.f32.mrf.mxu1 }
 0x2b6   :  { %v1843_v63 = vpop.eup %1842  ;;  %v1190_v0 = vmul.f32 0.5, %v1151_v38  ;;  %v1105_v1 = vadd.f32 %v1104_v62, %v2372_v23 }
 0x2b7   :  { %v1252_v2 = vmul.f32 0.5, %v1843_v63 }
 0x2b8   :  { %1846 = vtanh.f32 %v1190_v0  ;;  %v1191_v3 = vmul.f32 0.5, %v1105_v1  ;;  %v1845_v7 = vpop.eup %1844 }
 0x2b9   :  { %v1284_v4 = vadd.f32 0.5, %v1252_v2  ;;  %v1253_v11 = vmul.f32 0.5, %v1845_v7 }
 0x2ba   :  { %1848 = vtanh.f32 %v1191_v3 }
 0x2bb   :  { %v1313_v8 = vpack.c.bf16 %v1284_v4, %v1283_v49  ;;  %v1153_v9 = vpop.f32.mrf.mxu2  ;;  %v1285_v20 = vadd.f32 0.5, %v1253_v11 }
 0x2bc   :  { %v1154_v10 = vadd.f32 %v1153_v9, %v2375_v26 }
 0x2bd   :  { %1329 = vst [vmem:[#allocation14 + $0x10] sm:$0xff] %v1313_v8  ;;  %v1106_v12 = vpop.f32.mrf.mxu1 }
 0x2be   :  { %v1847_v13 = vpop.eup %1846  ;;  %v1192_v14 = vmul.f32 0.5, %v1154_v10  ;;  %v1107_v16 = vadd.f32 %v1106_v12, %v2372_v23 }
 0x2bf   :  { %v1254_v17 = vmul.f32 0.5, %v1847_v13 }
 0x2c0   :  { %1850 = vtanh.f32 %v1192_v14  ;;  %v1193_v18 = vmul.f32 0.5, %v1107_v16  ;;  %v1849_v22 = vpop.eup %1848 }
 0x2c1   :  { %v1286_v21 = vadd.f32 0.5, %v1254_v17  ;;  %v1255_v25 = vmul.f32 0.5, %v1849_v22 }
 0x2c2   :  { %1852 = vtanh.f32 %v1193_v18 }
 0x2c3   :  { %v1314_v6 = vpack.c.bf16 %v1286_v21, %v1285_v20  ;;  %v1155_v24 = vpop.f32.mrf.mxu2  ;;  %v1287_v29 = vadd.f32 0.5, %v1255_v25 }
 0x2c4   :  { %v1156_v56 = vadd.f32 %v1155_v24, %v2375_v26 }
 0x2c5   :  { %1330 = vst [vmem:[#allocation14 + $0x18] sm:$0xff] %v1314_v6  ;;  %v1109_v27 = vpop.f32.mrf.mxu1 }
 0x2c6   :  { %v1851_v50 = vpop.eup %1850  ;;  %v1194_v28 = vmul.f32 0.5, %v1156_v56  ;;  %v1110_v15 = vadd.f32 %v1109_v27, %v2372_v23 }
 0x2c7   :  { %v1256_v53 = vmul.f32 0.5, %v1851_v50 }
 0x2c8   :  { %1854 = vtanh.f32 %v1194_v28  ;;  %v1195_v30 = vmul.f32 0.5, %v1110_v15  ;;  %v1853_v33 = vpop.eup %1852 }
 0x2c9   :  { %v1288_v31 = vadd.f32 0.5, %v1256_v53  ;;  %v1257_v35 = vmul.f32 0.5, %v1853_v33 }
 0x2ca   :  { %1856 = vtanh.f32 %v1195_v30 }
 0x2cb   :  { %v1315_v32 = vpack.c.bf16 %v1288_v31, %v1287_v29  ;;  %v1158_v58 = vpop.f32.mrf.mxu2  ;;  %v1289_v43 = vadd.f32 0.5, %v1257_v35 }
 0x2cc   :  { %v1159_v34 = vadd.f32 %v1158_v58, %v2375_v26 }
 0x2cd   :  { %1331 = vst [vmem:[#allocation14 + $0x20] sm:$0xff] %v1315_v32  ;;  %v1111_v36 = vpop.f32.mrf.mxu1 }
 0x2ce   :  { %v1855_v37 = vpop.eup %1854  ;;  %v1196_v39 = vmul.f32 0.5, %v1159_v34  ;;  %v1112_v40 = vadd.f32 %v1111_v36, %v2372_v23 }
 0x2cf   :  { %v1258_v41 = vmul.f32 0.5, %v1855_v37 }
 0x2d0   :  { %1858 = vtanh.f32 %v1196_v39  ;;  %v1197_v42 = vmul.f32 0.5, %v1112_v40  ;;  %v1857_v45 = vpop.eup %1856 }
 0x2d1   :  { %v1290_v44 = vadd.f32 0.5, %v1258_v41  ;;  %v1259_v48 = vmul.f32 0.5, %v1857_v45 }
 0x2d2   :  { %1860 = vtanh.f32 %v1197_v42 }
 0x2d3   :  { %v1316_v46 = vpack.c.bf16 %v1290_v44, %v1289_v43  ;;  %v1160_v19 = vpop.f32.mrf.mxu2  ;;  %v1291_v5 = vadd.f32 0.5, %v1259_v48 }
 0x2d4   :  { %v1161_v47 = vadd.f32 %v1160_v19, %v2375_v26 }
 0x2d5   :  { %1332 = vst [vmem:[#allocation14 + $0x28] sm:$0xff] %v1316_v46  ;;  %v1114_v51 = vpop.f32.mrf.mxu1 }
 0x2d6   :  { %v1859_v54 = vpop.eup %1858  ;;  %v1198_v55 = vmul.f32 0.5, %v1161_v47  ;;  %v1115_v57 = vadd.f32 %v1114_v51, %v2372_v23 }
 0x2d7   :  { %v1260_v59 = vmul.f32 0.5, %v1859_v54 }
 0x2d8   :  { %1862 = vtanh.f32 %v1198_v55  ;;  %v1199_v61 = vmul.f32 0.5, %v1115_v57  ;;  %v1861_v38 = vpop.eup %1860 }
 0x2d9   :  { %v1292_v60 = vadd.f32 0.5, %v1260_v59  ;;  %v1261_v0 = vmul.f32 0.5, %v1861_v38 }
 0x2da   :  { %1864 = vtanh.f32 %v1199_v61 }
 0x2db   :  { %v1317_v52 = vpack.c.bf16 %v1292_v60, %v1291_v5  ;;  %v1163_v62 = vpop.f32.mrf.mxu2  ;;  %v1293_v8 = vadd.f32 0.5, %v1261_v0 }
 0x2dc   :  { %v1164_v63 = vadd.f32 %v1163_v62, %v2375_v26 }
 0x2dd   :  { %1333 = vst [vmem:[#allocation14 + $0x30] sm:$0xff] %v1317_v52  ;;  %v1116_v1 = vpop.f32.mrf.mxu1 }
 0x2de   :  { %v1863_v2 = vpop.eup %1862  ;;  %v1200_v3 = vmul.f32 0.5, %v1164_v63  ;;  %v1117_v49 = vadd.f32 %v1116_v1, %v2372_v23 }
 0x2df   :  { %v1262_v4 = vmul.f32 0.5, %v1863_v2 }
 0x2e0   :  { %1866 = vtanh.f32 %v1200_v3  ;;  %v1201_v7 = vmul.f32 0.5, %v1117_v49  ;;  %v1865_v10 = vpop.eup %1864 }
 0x2e1   :  { %v1294_v9 = vadd.f32 0.5, %v1262_v4  ;;  %v1263_v14 = vmul.f32 0.5, %v1865_v10 }
 0x2e2   :  { %1868 = vtanh.f32 %v1201_v7 }
 0x2e3   :  { %v1318_v11 = vpack.c.bf16 %v1294_v9, %v1293_v8  ;;  %v1165_v12 = vpop.f32.mrf.mxu2  ;;  %v1295_v6 = vadd.f32 0.5, %v1263_v14 }
 0x2e4   :  { %v1166_v13 = vadd.f32 %v1165_v12, %v2375_v26 }
 0x2e5   :  { %1334 = vst [vmem:[#allocation14 + $0x38] sm:$0xff] %v1318_v11  ;;  %v1119_v16 = vpop.f32.mrf.mxu1 }
 0x2e6   :  { %v1867_v17 = vpop.eup %1866  ;;  %v1202_v18 = vmul.f32 0.5, %v1166_v13  ;;  %v1120_v20 = vadd.f32 %v1119_v16, %v2372_v23 }
 0x2e7   :  { %v1264_v21 = vmul.f32 0.5, %v1867_v17 }
 0x2e8   :  { %1870 = vtanh.f32 %v1202_v18  ;;  %v1203_v22 = vmul.f32 0.5, %v1120_v20  ;;  %v1869_v56 = vpop.eup %1868 }
 0x2e9   :  { %v1296_v24 = vadd.f32 0.5, %v1264_v21  ;;  %v1265_v28 = vmul.f32 0.5, %v1869_v56 }
 0x2ea   :  { %1872 = vtanh.f32 %v1203_v22 }
 0x2eb   :  { %v1319_v25 = vpack.c.bf16 %v1296_v24, %v1295_v6  ;;  %v1168_v27 = vpop.f32.mrf.mxu2  ;;  %v1297_v32 = vadd.f32 0.5, %v1265_v28 }
 0x2ec   :  { %v1169_v50 = vadd.f32 %v1168_v27, %v2375_v26 }
 0x2ed   :  { %1335 = vst [vmem:[#allocation14 + $0x40] sm:$0xff] %v1319_v25  ;;  %v1121_v15 = vpop.f32.mrf.mxu1 }
 0x2ee   :  { %v1871_v53 = vpop.eup %1870  ;;  %v1204_v30 = vmul.f32 0.5, %v1169_v50  ;;  %v1122_v29 = vadd.f32 %v1121_v15, %v2372_v23 }
 0x2ef   :  { %v1266_v31 = vmul.f32 0.5, %v1871_v53 }
 0x2f0   :  { %1874 = vtanh.f32 %v1204_v30  ;;  %v1205_v33 = vmul.f32 0.5, %v1122_v29  ;;  %v1873_v34 = vpop.eup %1872 }
 0x2f1   :  { %v1298_v58 = vadd.f32 0.5, %v1266_v31  ;;  %v1267_v39 = vmul.f32 0.5, %v1873_v34 }
 0x2f2   :  { %1876 = vtanh.f32 %v1205_v33 }
 0x2f3   :  { %v1320_v35 = vpack.c.bf16 %v1298_v58, %v1297_v32  ;;  %v1170_v36 = vpop.f32.mrf.mxu2  ;;  %v1299_v46 = vadd.f32 0.5, %v1267_v39 }
 0x2f4   :  { %v1171_v37 = vadd.f32 %v1170_v36, %v2375_v26 }
 0x2f5   :  { %1336 = vst [vmem:[#allocation14 + $0x48] sm:$0xff] %v1320_v35  ;;  %v1124_v40 = vpop.f32.mrf.mxu1 }
 0x2f6   :  { %v1875_v41 = vpop.eup %1874  ;;  %v1206_v42 = vmul.f32 0.5, %v1171_v37  ;;  %v1125_v43 = vadd.f32 %v1124_v40, %v2372_v23 }
 0x2f7   :  { %v1268_v44 = vmul.f32 0.5, %v1875_v41 }
 0x2f8   :  { %1878 = vtanh.f32 %v1206_v42  ;;  %v1207_v45 = vmul.f32 0.5, %v1125_v43  ;;  %v1877_v47 = vpop.eup %1876 }
 0x2f9   :  { %v1300_v19 = vadd.f32 0.5, %v1268_v44  ;;  %v1269_v55 = vmul.f32 0.5, %v1877_v47 }
 0x2fa   :  { %1880 = vtanh.f32 %v1207_v45 }
 0x2fb   :  { %v1321_v48 = vpack.c.bf16 %v1300_v19, %v1299_v46  ;;  %v1173_v51 = vpop.f32.mrf.mxu2  ;;  %v1301_v52 = vadd.f32 0.5, %v1269_v55 }
 0x2fc   :  { %v1174_v54 = vadd.f32 %v1173_v51, %v2375_v26 }
 0x2fd   :  { %1337 = vst [vmem:[#allocation14 + $0x50] sm:$0xff] %v1321_v48  ;;  %v1126_v57 = vpop.f32.mrf.mxu1 }
 0x2fe   :  { %v1879_v59 = vpop.eup %1878  ;;  %v1208_v61 = vmul.f32 0.5, %v1174_v54  ;;  %v1127_v5 = vadd.f32 %v1126_v57, %v2372_v23 }
 0x2ff   :  { %v1270_v60 = vmul.f32 0.5, %v1879_v59 }
 0x300   :  { %1882 = vtanh.f32 %v1208_v61  ;;  %v1209_v38 = vmul.f32 0.5, %v1127_v5  ;;  %v1881_v63 = vpop.eup %1880 }
 0x301   :  { %v1302_v62 = vadd.f32 0.5, %v1270_v60  ;;  %v1271_v3 = vmul.f32 0.5, %v1881_v63 }
 0x302   :  { %1884 = vtanh.f32 %v1209_v38 }
 0x303   :  { %v1322_v0 = vpack.c.bf16 %v1302_v62, %v1301_v52  ;;  %v1175_v1 = vpop.f32.mrf.mxu2  ;;  %v1303_v11 = vadd.f32 0.5, %v1271_v3 }
 0x304   :  { %v1176_v2 = vadd.f32 %v1175_v1, %v2375_v26 }
 0x305   :  { %1338 = vst [vmem:[#allocation14 + $0x58] sm:$0xff] %v1322_v0  ;;  %v1129_v49 = vpop.f32.mrf.mxu1 }
 0x306   :  { %v1883_v4 = vpop.eup %1882  ;;  %v1210_v7 = vmul.f32 0.5, %v1176_v2  ;;  %v1130_v8 = vadd.f32 %v1129_v49, %v2372_v23 }
 0x307   :  { %v1272_v9 = vmul.f32 0.5, %v1883_v4 }
 0x308   :  { %1886 = vtanh.f32 %v1210_v7  ;;  %v1211_v10 = vmul.f32 0.5, %v1130_v8  ;;  %v1885_v13 = vpop.eup %1884 }
 0x309   :  { %v1304_v12 = vadd.f32 0.5, %v1272_v9  ;;  %v1273_v18 = vmul.f32 0.5, %v1885_v13 }
 0x30a   :  { %1888 = vtanh.f32 %v1211_v10 }
 0x30b   :  { %v1323_v14 = vpack.c.bf16 %v1304_v12, %v1303_v11  ;;  %v1178_v16 = vpop.f32.mrf.mxu2  ;;  %v1305_v25 = vadd.f32 0.5, %v1273_v18 }
 0x30c   :  { %v1179_v17 = vadd.f32 %v1178_v16, %v2375_v26 }
 0x30d   :  { %1339 = vst [vmem:[#allocation14 + $0x60] sm:$0xff] %v1323_v14  ;;  %v1131_v20 = vpop.f32.mrf.mxu1 }
 0x30e   :  { %v1887_v21 = vpop.eup %1886  ;;  %v1212_v22 = vmul.f32 0.5, %v1179_v17  ;;  %v1132_v6 = vadd.f32 %v1131_v20, %v2372_v23 }
 0x30f   :  { %v1274_v24 = vmul.f32 0.5, %v1887_v21 }
 0x310   :  { %1890 = vtanh.f32 %v1212_v22  ;;  %v1213_v56 = vmul.f32 0.5, %v1132_v6  ;;  %v1889_v50 = vpop.eup %1888 }
 0x311   :  { %v1306_v27 = vadd.f32 0.5, %v1274_v24  ;;  %v1275_v30 = vmul.f32 0.5, %v1889_v50 }
 0x312   :  { %1892 = vtanh.f32 %v1213_v56 }
 0x313   :  { %v1324_v28 = vpack.c.bf16 %v1306_v27, %v1305_v25  ;;  %v1180_v15 = vpop.f32.mrf.mxu2  ;;  %v1307_v32 = vadd.f32 0.5, %v1275_v30 }
 0x314   :  { %v1181_v53 = vadd.f32 %v1180_v15, %v2375_v26 }
 0x315   :  { %1340 = vst [vmem:[#allocation14 + $0x68] sm:$0xff] %v1324_v28 }
 0x316   :  { %v1891_v29 = vpop.eup %1890  ;;  %v1214_v31 = vmul.f32 0.5, %v1181_v53 }
 0x317   :  { %v1276_v33 = vmul.f32 0.5, %v1891_v29 }
 0x318   :  { %1894 = vtanh.f32 %v1214_v31  ;;  %v1893_v23 = vpop.eup %1892 }
 0x319   :  { %v1308_v58 = vadd.f32 0.5, %v1276_v33  ;;  %v1277_v35 = vmul.f32 0.5, %v1893_v23 }
 0x31b   :  { %v1325_v34 = vpack.c.bf16 %v1308_v58, %v1307_v32  ;;  %v1309_v39 = vadd.f32 0.5, %v1277_v35 }
 0x31d   :  { %1341 = vst [vmem:[#allocation14 + $0x70] sm:$0xff] %v1325_v34 }
 0x31e   :  { %v1895_v36 = vpop.eup %1894 }
 0x31f   :  { %v1278_v37 = vmul.f32 0.5, %v1895_v36 }
 0x321   :  { %v1310_v40 = vadd.f32 0.5, %v1278_v37 }
 0x323   :  { %v1326_v41 = vpack.c.bf16 %v1310_v40, %v1309_v39 }
 0x325   :  { %1342 = vst [vmem:[#allocation14 + $0x78] sm:$0xff] %v1326_v41 }
 0x326   :  { %1362 = vsyncadd [#allocation4], 1920  ;;  %s1365_s15 = sshll.u32 %s2432_s12, 4  ;;  %s2135_s16 = smov [#allocation14]   ;;  %s1366_s15 = int_to_ptr.hbm [resolvable:$true] %s1365_s15 }
 0x327   :  { %s1363_s17 = sshll.u32 %s2135_s16, 4  ;;  %s1364_s17 = int_to_ptr.vmem [resolvable:$true] %s1363_s17 }
 0x328   :  { %1371 = dma.vmem_to_hbm [thread:$0]  %s1364_s17, 128, %s1366_s15, [#allocation4], %s2125_s30, %s2125_s30, %s2126_s14  }
 0x329   :  { %1375 = vsyncadd [#allocation16], 1920  ;;  %s1378_s19 = sshll.u32 %s2433_s13, 4  ;;  %s2136_s0 = smov [#allocation15]   ;;  %s1379_s19 = int_to_ptr.hbm [resolvable:$true] %s1378_s19 }
 0x32a   :  { %s1376_s8 = sshll.u32 %s2136_s0, 4  ;;  %s1377_s8 = int_to_ptr.vmem [resolvable:$true] %s1376_s8 }
 0x32b   :  { %1384 = dma.vmem_to_hbm [thread:$0]  %s1377_s8, 128, %s1379_s19, [#allocation16], %s2125_s30, %s2125_s30, %s2126_s14  }
 0x32c   :  { %2120 = dma.done.wait [#allocation4], 2048  }
 0x32d   :  { %2121 = vsyncadd [#allocation4], 4294965248 }
 0x32e   :  { %2122 = dma.done.wait [#allocation16], 2048  }
 0x32f   :  { %2123 = vsyncadd [#allocation16], 4294965248 }
 0x330   :  { %1393 = vsyncpa [#allocation3], 1 }
 0x331   :  { %1394 = vsyncpa [#allocation6], 1 }
 0x332   :  { %1395 = vsyncpa [#allocation9], 1 }
 0x333   :  { %1396 = vsyncpa [#allocation12], 1 }
 0x334   :  { %1397 = vsyncpa [#allocation4], 1 }
 0x335   :  { %1398 = vsyncpa [#allocation16], 1 }

</bundles_post_ra>
